<compile_context>
chip_gen: v5e
topology: v5e:2x2
jax: 0.10.0
libtpu: 0.0.40
codegen_flags: <defaults>
</compile_context>

<pallas_src>
import functools

import jax
import jax.numpy as jnp
from jax.experimental import pallas as pl
from jax.experimental.pallas import tpu as pltpu

_MIB = 1 << 20
_MIN_ROW_TILE = 16          # >= bf16 (16,128) sublane packing


def _round_up(x, m):
    return ((x + m - 1) // m) * m


@functools.lru_cache(maxsize=None)
def _vmem_policy():
    """(vmem_limit_bytes, resident_path_budget_bytes), generation-aware."""
    cap = None
    try:
        cap = getattr(pltpu.get_tpu_info(), "vmem_capacity_bytes", None)
    except Exception:
        cap = None
    if not cap:
        cap = 64 * _MIB                       # v7x per-core capacity: safe floor
    limit = min(int(cap) * 3 // 4, 100 * _MIB)    # ~48 MiB v7x, ~96 MiB v5e/v6e
    budget = max(limit - 12 * _MIB, limit // 2)   # headroom for compiler scratch
    return limit, budget


@functools.lru_cache(maxsize=None)
def _num_tensorcores():
    """Best-effort TensorCore count (v7x = 2); defaults to 1 (v5e/v6e)."""
    try:
        info = pltpu.get_tpu_info()
    except Exception:
        return 1
    for attr in ("num_cores", "core_count", "tensorcore_count", "num_tensorcores"):
        v = getattr(info, attr, None)
        if isinstance(v, int) and v > 0:
            return v
    return 1


def _choose_row_tile(m, preferred=512, num_cores=1):
    """Row tile for the streamed LHS.

    * m > preferred: use `preferred` (multiple of 256 -> MXU friendly).
    * Small m: use the full dim as a single block (no padding needed, the
      full-dim exemption covers non-(8,128) shapes).  Only split into >=2
      blocks when the chip actually has multiple TensorCores (megacore)."""
    if m > preferred:
        return preferred
    if num_cores > 1 and m >= 2 * _MIN_ROW_TILE:
        return _round_up(-(-m // num_cores), 8)
    return m


# ----------------------------------------------------------------------------
# Kernel bodies
# ----------------------------------------------------------------------------
def _make_resident_kernel(has_bias, activation):
    """out_tile = act(cast_bf16(a_tile) @ b_full + bias); b is VMEM-resident.

    The streamed LHS tile arrives in its HBM dtype (f32) and is cast to bf16
    in-register so the MXU runs at bf16 rate without a pre-cast HBM pass."""
    def _compute(a_ref, b_ref, o_ref, bias_ref=None):
        acc = jnp.dot(a_ref[...].astype(jnp.bfloat16), b_ref[...],
                      preferred_element_type=jnp.float32)
        if bias_ref is not None:
            acc = acc + bias_ref[...]
        if activation:
            acc = jnp.maximum(acc, 0.0)
        o_ref[...] = acc.astype(o_ref.dtype)

    if has_bias:
        def kernel(a_ref, b_ref, bias_ref, o_ref):
            _compute(a_ref, b_ref, o_ref, bias_ref)
    else:
        def kernel(a_ref, b_ref, o_ref):
            _compute(a_ref, b_ref, o_ref)
    return kernel


def _make_tiled_kernel(has_bias, activation):
    """(i, j, k)-tiled matmul: accumulate into a f32 VMEM scratch, write the
    output block in the requested output dtype (fused bias/ReLU) at k==last."""
    def _body(a_ref, b_ref, o_ref, acc_ref, bias_ref=None):
        k = pl.program_id(2)

        @pl.when(k == 0)
        def _():
            acc_ref[...] = jnp.zeros_like(acc_ref)

        acc_ref[...] += jnp.dot(a_ref[...], b_ref[...],
                                preferred_element_type=jnp.float32)

        @pl.when(k == pl.num_programs(2) - 1)
        def _():
            out = acc_ref[...]
            if bias_ref is not None:
                out = out + bias_ref[...]
            if activation:
                out = jnp.maximum(out, 0.0)
            o_ref[...] = out.astype(o_ref.dtype)

    if has_bias:
        def kernel(a_ref, b_ref, bias_ref, o_ref, acc_ref):
            _body(a_ref, b_ref, o_ref, acc_ref, bias_ref)
    else:
        def kernel(a_ref, b_ref, o_ref, acc_ref):
            _body(a_ref, b_ref, o_ref, acc_ref)
    return kernel


# ----------------------------------------------------------------------------
# pallas_call wrappers
# ----------------------------------------------------------------------------
def _matmul_resident(a, b16, bias2d, *, tm, activation, out_dtype, cost,
                     vmem_limit):
    """One streaming pass over row-tiled f32 `a`; bf16 `b16` (and bias) fully
    VMEM-resident (constant index_map -> DMA'd once).  No padding, no slice."""
    m, k = a.shape
    _, n = b16.shape
    has_bias = bias2d is not None
    grid = (pl.cdiv(m, tm),)

    def _run(single_buffer_rhs):
        def resident_spec(shape):
            if single_buffer_rhs:
                # Constant index_map -> block never changes; single buffer
                # halves the resident-RHS VMEM footprint.
                return pl.BlockSpec(shape, lambda i: (0, 0),
                                    pipeline_mode=pl.Buffered(1))
            return pl.BlockSpec(shape, lambda i: (0, 0))

        in_specs = [
            pl.BlockSpec((tm, k), lambda i: (i, 0)),   # streamed f32 row panel
            resident_spec((k, n)),                     # resident bf16 RHS
        ]
        args = [a, b16]
        if has_bias:
            in_specs.append(resident_spec((1, n)))
            args.append(bias2d)

        return pl.pallas_call(
            _make_resident_kernel(has_bias, activation),
            out_shape=jax.ShapeDtypeStruct((m, n), out_dtype),
            grid_spec=pltpu.PrefetchScalarGridSpec(
                num_scalar_prefetch=0,
                grid=grid,
                in_specs=in_specs,
                out_specs=pl.BlockSpec((tm, n), lambda i: (i, 0)),
            ),
            compiler_params=pltpu.CompilerParams(
                dimension_semantics=("parallel",),
                vmem_limit_bytes=vmem_limit,
            ),
            cost_estimate=cost,
        )(*args)

    try:
        return _run(True)
    except Exception:
        # pipeline_mode / pl.Buffered(1) not supported on this jax/libtpu:
        # fall back to the default double-buffered resident RHS.
        return _run(False)


def _matmul_tiled(a, b, bias2d=None, *, activation=False,
                  out_dtype=jnp.float32, cost=None,
                  tm=512, tn=512, tk=512, num_cores=None, vmem_limit=None):
    """General (i, j, k)-tiled fallback for graphs too large for the resident
    path.  Operands are bf16 pre-cast + zero-padded once (each tile is then
    re-read mp/tm or np_/tn times, so halving every revisit read wins), and
    accumulation happens in a f32 VMEM scratch with an in-kernel epilogue."""
    if vmem_limit is None:
        vmem_limit, _ = _vmem_policy()
    if num_cores is None:
        num_cores = _num_tensorcores()

    ma, ka = a.shape
    _, na = b.shape
    tm = _choose_row_tile(ma, preferred=tm, num_cores=num_cores)
    tn = min(tn, na)
    tk = min(tk, ka)
    mp = _round_up(ma, tm)
    np_ = _round_up(na, tn)
    kp = _round_up(ka, tk)
    a16 = jnp.pad(a.astype(jnp.bfloat16), ((0, mp - ma), (0, kp - ka)))
    b16 = jnp.pad(b.astype(jnp.bfloat16), ((0, kp - ka), (0, np_ - na)))
    has_bias = bias2d is not None
    if has_bias and bias2d.shape[1] != np_:
        bias2d = jnp.pad(bias2d, ((0, 0), (0, np_ - bias2d.shape[1])))

    in_specs = [
        pl.BlockSpec((tm, tk), lambda i, j, k: (i, k)),
        pl.BlockSpec((tk, tn), lambda i, j, k: (k, j)),
    ]
    args = [a16, b16]
    if has_bias:
        in_specs.append(pl.BlockSpec((1, tn), lambda i, j, k: (0, j)))
        args.append(bias2d)

    out = pl.pallas_call(
        _make_tiled_kernel(has_bias, activation),
        out_shape=jax.ShapeDtypeStruct((mp, np_), out_dtype),
        grid_spec=pltpu.PrefetchScalarGridSpec(
            num_scalar_prefetch=0,
            grid=(mp // tm, np_ // tn, kp // tk),
            in_specs=in_specs,
            out_specs=pl.BlockSpec((tm, tn), lambda i, j, k: (i, j)),
            scratch_shapes=[pltpu.VMEM((tm, tn), jnp.float32)],
        ),
        compiler_params=pltpu.CompilerParams(
            dimension_semantics=("parallel", "parallel", "arbitrary"),
            vmem_limit_bytes=vmem_limit,
        ),
        cost_estimate=cost,
    )(*args)
    if (mp, np_) != (ma, na):
        out = out[:ma, :na]
    return out


def pallas_matmul(a, b, bias=None, *, activation=False, out_dtype=jnp.float32):
    """out = act(a @ b + bias).

    `a` (the big operand: x or support) is streamed in its native dtype and
    cast to bf16 in-kernel; `b` (the small operand: W or xw) is held bf16 and
    VMEM-resident whenever it fits.  f32 accumulation on the MXU."""
    m, k = a.shape
    k2, n = b.shape
    assert k == k2, (a.shape, b.shape)
    has_bias = bias is not None

    b16 = b.astype(jnp.bfloat16)                       # small operand only
    bias2d = bias.astype(jnp.float32).reshape(1, n) if has_bias else None

    a_itemsize = jnp.dtype(a.dtype).itemsize
    out_itemsize = jnp.dtype(out_dtype).itemsize
    cost = pl.CostEstimate(
        flops=2 * m * n * k,
        transcendentals=0,
        bytes_accessed=(m * k * a_itemsize + k * n * 2 + m * n * out_itemsize
                        + (n * 4 if has_bias else 0)),
    )

    vmem_limit, budget = _vmem_policy()
    num_cores = _num_tensorcores()
    tm = _choose_row_tile(m, preferred=512, num_cores=num_cores)

    def _resident_bytes(tm_):
        return (2 * tm_ * k * a_itemsize          # double-buffered A row panel
                + k * n * 2                       # resident bf16 RHS (1 buffer)
                + 2 * tm_ * n * out_itemsize      # double-buffered output tile
                + (n * 4 if has_bias else 0))     # resident bias

    while tm > _MIN_ROW_TILE and _resident_bytes(tm) > budget:
        tm = max(_MIN_ROW_TILE, _round_up(tm // 2, 8))
    use_resident = (_resident_bytes(tm) <= budget and tm >= min(128, m))

    if use_resident:
        try:
            return _matmul_resident(a, b16, bias2d, tm=tm,
                                    activation=activation, out_dtype=out_dtype,
                                    cost=cost, vmem_limit=vmem_limit)
        except Exception:
            # Extremely defensive: if the resident path fails to lower on this
            # generation (e.g. VMEM mis-estimate), fall through to the tiled
            # kernel rather than crashing.
            pass

    return _matmul_tiled(a, b16, bias2d, activation=activation,
                         out_dtype=out_dtype, cost=cost,
                         num_cores=num_cores, vmem_limit=vmem_limit)


# ----------------------------------------------------------------------------
# GraphConvolution forward
# ----------------------------------------------------------------------------
def graph_convolution_forward(x, support, weight, bias=None, *,
                              activation=True, featureless=False):
    """JAX/Pallas port of GraphConvolution.forward (eval / inference mode).

    Dropout / sparse_dropout are training-only -> identity here.
    Note: xw is materialized in bf16 between the two matmuls (one extra
    rounding step vs. a pure-f32 PyTorch reference)."""
    if not featureless:
        # xw = x @ W, produced directly in bf16 so the dominant support @ xw
        # matmul streams / holds half the bytes.
        xw = pallas_matmul(x, weight, out_dtype=jnp.bfloat16)
    else:
        xw = weight
    # support @ xw (+ bias) (+ relu) fused into a single kernel; xw stays
    # VMEM-resident across all row blocks of support.
    return pallas_matmul(support, xw, bias=bias, activation=activation,
                         out_dtype=jnp.float32)


if __name__ == "__main__":
    # Small, deterministic example consistent with the module:
    # N nodes, input_dim features, output_dim hidden units.
    N, input_dim, output_dim = 256, 128, 64

    key = jax.random.PRNGKey(0)
    kx, ks, kw, kb, kt1, kt2 = jax.random.split(key, 6)

    x = jax.random.normal(kx, (N, input_dim), dtype=jnp.float32)
    # Dense "support" (normalized adjacency stand-in).
    support = jax.random.uniform(ks, (N, N), dtype=jnp.float32) / N
    # Parameter init mirrors torch.randn(input_dim, output_dim).
    weight = jax.random.normal(kw, (input_dim, output_dim), dtype=jnp.float32)

    def ref_bf16(x_, s_, w_, b_=None, act=True):
        """Reference with the same bf16-input / f32-accumulation arithmetic."""
        xw = jnp.dot(x_.astype(jnp.bfloat16), w_.astype(jnp.bfloat16),
                     preferred_element_type=jnp.float32)
        o = jnp.dot(s_.astype(jnp.bfloat16), xw.astype(jnp.bfloat16),
                    preferred_element_type=jnp.float32)
        if b_ is not None:
            o = o + b_
        return jnp.maximum(o, 0.0) if act else o

    # 1) Default GCN config: bias=False, activation=True (resident-RHS path).
    out = jax.block_until_ready(
        graph_convolution_forward(x, support, weight, bias=None,
                                  activation=True))
    assert out.shape == (N, output_dim)
    assert out.dtype == jnp.float32
    assert jnp.allclose(out, ref_bf16(x, support, weight), atol=1e-2, rtol=1e-2)
    ref_f32 = jnp.maximum(support @ (x @ weight), 0.0)
    assert jnp.allclose(out, ref_f32, atol=5e-2, rtol=5e-2)

    # 2) Bias path (bias=True in the module).
    bias = jax.random.normal(kb, (output_dim,), dtype=jnp.float32) * 0.1
    out_b = jax.block_until_ready(
        graph_convolution_forward(x, support, weight, bias=bias,
                                  activation=True))
    assert jnp.allclose(out_b, ref_bf16(x, support, weight, bias),
                        atol=1e-2, rtol=1e-2)

    # 3) Exercise the fully-tiled fallback kernel (multi-step K reduction,
    #    VMEM scratch accumulator, in-kernel epilogue cast).
    a_t = jax.random.normal(kt1, (256, 384), dtype=jnp.float32)
    b_t = jax.random.normal(kt2, (384, 128), dtype=jnp.float32)
    out_t = jax.block_until_ready(
        _matmul_tiled(a_t, b_t, activation=True, tm=128, tn=128, tk=128))
    ref_t = jnp.maximum(
        jnp.dot(a_t.astype(jnp.bfloat16), b_t.astype(jnp.bfloat16),
                preferred_element_type=jnp.float32), 0.0)
    assert jnp.allclose(out_t, ref_t, atol=1e-2, rtol=1e-2)

    print("KERNEL_OK")
</pallas_src>

<mosaic_0001>
module attributes {stable_mosaic.version = 11 : i64} {
  func.func @kernel(%arg0: i32, %arg1: memref<256x128xf32, #tpu.memory_space<vmem>>, %arg2: memref<128x64xbf16, #tpu.memory_space<vmem>>, %arg3: memref<256x64xbf16, #tpu.memory_space<vmem>>) attributes {dimension_semantics = [#tpu.dimension_semantics<parallel>], iteration_bounds = array<i64: 1>, scalar_prefetch = 0 : i64, scratch_operands = 0 : i64, tpu.core_type = #tpu.core_type<tc>, window_params = [{transform_indices = @transform_0, window_bounds = array<i64: 256, 128>}, {pipeline_mode = #tpu.pipeline_mode<synchronous>, transform_indices = @transform_1, window_bounds = array<i64: 128, 64>}, {transform_indices = @transform_2, window_bounds = array<i64: 256, 64>}]} {
    %c0 = arith.constant 0 : index
    %c0_0 = arith.constant 0 : index
    %0 = vector.load %arg1[%c0, %c0_0] : memref<256x128xf32, #tpu.memory_space<vmem>>, vector<256x128xf32>
    %1 = arith.truncf %0 : vector<256x128xf32> to vector<256x128xbf16>
    %c0_1 = arith.constant 0 : index
    %c0_2 = arith.constant 0 : index
    %2 = vector.load %arg2[%c0_1, %c0_2] : memref<128x64xbf16, #tpu.memory_space<vmem>>, vector<128x64xbf16>
    %cst = arith.constant dense<0.000000e+00> : vector<256x64xf32>
    %3 = tpu.matmul %1, %2, %cst {dimension_numbers = #tpu.dot_dimension_numbers<[1], [0], [0], [1], [0, 0, 1, 1], [], []>} : vector<256x128xbf16>, vector<128x64xbf16>, vector<256x64xf32> -> vector<256x64xf32>
    %4 = arith.truncf %3 : vector<256x64xf32> to vector<256x64xbf16>
    %c0_3 = arith.constant 0 : index
    %c0_4 = arith.constant 0 : index
    %5 = vector.load %arg3[%c0_3, %c0_4] : memref<256x64xbf16, #tpu.memory_space<vmem>>, vector<256x64xbf16>
    tpu.vector_store %arg3[%c0_3, %c0_4], %4 {strides = array<i32>} : memref<256x64xbf16, #tpu.memory_space<vmem>>, vector<256x64xbf16>,
    return
  }
  func.func @transform_0(%arg0: i32) -> (i32, i32) {
    %c0_i32 = arith.constant 0 : i32
    %c0_i32_0 = arith.constant 0 : i32
    return %arg0, %c0_i32 : i32, i32
  }
  func.func @transform_1(%arg0: i32) -> (i32, i32) {
    %c0_i32 = arith.constant 0 : i32
    %c0_i32_0 = arith.constant 0 : i32
    %c0_i32_1 = arith.constant 0 : i32
    return %c0_i32, %c0_i32_0 : i32, i32
  }
  func.func @transform_2(%arg0: i32) -> (i32, i32) {
    %c0_i32 = arith.constant 0 : i32
    %c0_i32_0 = arith.constant 0 : i32
    return %arg0, %c0_i32 : i32, i32
  }
}

module attributes {stable_mosaic.version = 11 : i64} {
  func.func @kernel(%arg0: i32, %arg1: memref<256x128xf32, #tpu.memory_space<vmem>>, %arg2: memref<128x64xbf16, #tpu.memory_space<vmem>>, %arg3: memref<256x64xbf16, #tpu.memory_space<vmem>>) attributes {dimension_semantics = [#tpu.dimension_semantics<parallel>], iteration_bounds = array<i64: 1>, scalar_prefetch = 0 : i64, scratch_operands = 0 : i64, tpu.core_type = #tpu.core_type<tc>, window_params = [{transform_indices = @transform_0, window_bounds = array<i64: 256, 128>}, {pipeline_mode = #tpu.pipeline_mode<synchronous>, transform_indices = @transform_1, window_bounds = array<i64: 128, 64>}, {transform_indices = @transform_2, window_bounds = array<i64: 256, 64>}]} {
    %c0 = arith.constant 0 : index
    %c0_0 = arith.constant 0 : index
    %0 = vector.load %arg1[%c0, %c0_0] : memref<256x128xf32, #tpu.memory_space<vmem>>, vector<256x128xf32>
    %1 = arith.truncf %0 : vector<256x128xf32> to vector<256x128xbf16>
    %c0_1 = arith.constant 0 : index
    %c0_2 = arith.constant 0 : index
    %2 = vector.load %arg2[%c0_1, %c0_2] : memref<128x64xbf16, #tpu.memory_space<vmem>>, vector<128x64xbf16>
    %cst = arith.constant dense<0.000000e+00> : vector<256x64xf32>
    %3 = tpu.matmul %1, %2, %cst {dimension_numbers = #tpu.dot_dimension_numbers<[1], [0], [0], [1], [0, 0, 1, 1], [], []>} : vector<256x128xbf16>, vector<128x64xbf16>, vector<256x64xf32> -> vector<256x64xf32>
    %4 = arith.truncf %3 : vector<256x64xf32> to vector<256x64xbf16>
    %c0_3 = arith.constant 0 : index
    %c0_4 = arith.constant 0 : index
    %5 = vector.load %arg3[%c0_3, %c0_4] : memref<256x64xbf16, #tpu.memory_space<vmem>>, vector<256x64xbf16>
    tpu.vector_store %arg3[%c0_3, %c0_4], %4 {strides = array<i32>} : memref<256x64xbf16, #tpu.memory_space<vmem>>, vector<256x64xbf16>,
    return
  }
  func.func @transform_0(%arg0: i32) -> (i32, i32) {
    %c0_i32 = arith.constant 0 : i32
    %c0_i32_0 = arith.constant 0 : i32
    return %arg0, %c0_i32 : i32, i32
  }
  func.func @transform_1(%arg0: i32) -> (i32, i32) {
    %c0_i32 = arith.constant 0 : i32
    %c0_i32_0 = arith.constant 0 : i32
    %c0_i32_1 = arith.constant 0 : i32
    return %c0_i32, %c0_i32_0 : i32, i32
  }
  func.func @transform_2(%arg0: i32) -> (i32, i32) {
    %c0_i32 = arith.constant 0 : i32
    %c0_i32_0 = arith.constant 0 : i32
    return %arg0, %c0_i32 : i32, i32
  }
}

module attributes {stable_mosaic.version = 11 : i64} {
  func.func @kernel(%arg0: i32, %arg1: i32, %arg2: i32, %arg3: memref<256x128xbf16, #tpu.memory_space<vmem>>, %arg4: memref<128x64xbf16, #tpu.memory_space<vmem>>, %arg5: memref<256x64xbf16, #tpu.memory_space<vmem>>, %arg6: memref<256x64xf32, #tpu.memory_space<vmem>>) attributes {dimension_semantics = [#tpu.dimension_semantics<parallel>, #tpu.dimension_semantics<parallel>, #tpu.dimension_semantics<arbitrary>], iteration_bounds = array<i64: 1, 1, 1>, scalar_prefetch = 0 : i64, scratch_operands = 1 : i64, tpu.core_type = #tpu.core_type<tc>, window_params = [{transform_indices = @transform_0, window_bounds = array<i64: 256, 128>}, {transform_indices = @transform_1, window_bounds = array<i64: 128, 64>}, {transform_indices = @transform_2, window_bounds = array<i64: 256, 64>}]} {
    %c0_i32 = arith.constant 0 : i32
    %0 = arith.cmpi eq, %arg2, %c0_i32 : i32
    %1 = arith.extui %0 : i1 to i32
    %c0_i32_0 = arith.constant 0 : i32
    %2 = arith.cmpi ne, %1, %c0_i32_0 : i32
    scf.if %2 {
      %cst_10 = arith.constant 0.000000e+00 : f32
      %12 = vector.broadcast %cst_10 : f32 to vector<256x64xf32>
      %c0_11 = arith.constant 0 : index
      %c0_12 = arith.constant 0 : index
      %13 = vector.load %arg6[%c0_11, %c0_12] : memref<256x64xf32, #tpu.memory_space<vmem>>, vector<256x64xf32>
      tpu.vector_store %arg6[%c0_11, %c0_12], %12 {strides = array<i32>} : memref<256x64xf32, #tpu.memory_space<vmem>>, vector<256x64xf32>,
    } else {
    }
    %c0 = arith.constant 0 : index
    %c0_1 = arith.constant 0 : index
    %3 = vector.load %arg6[%c0, %c0_1] : memref<256x64xf32, #tpu.memory_space<vmem>>, vector<256x64xf32>
    %c0_2 = arith.constant 0 : index
    %c0_3 = arith.constant 0 : index
    %4 = vector.load %arg3[%c0_2, %c0_3] : memref<256x128xbf16, #tpu.memory_space<vmem>>, vector<256x128xbf16>
    %c0_4 = arith.constant 0 : index
    %c0_5 = arith.constant 0 : index
    %5 = vector.load %arg4[%c0_4, %c0_5] : memref<128x64xbf16, #tpu.memory_space<vmem>>, vector<128x64xbf16>
    %cst = arith.constant dense<0.000000e+00> : vector<256x64xf32>
    %6 = tpu.matmul %4, %5, %cst {dimension_numbers = #tpu.dot_dimension_numbers<[1], [0], [0], [1], [0, 0, 1, 1], [], []>} : vector<256x128xbf16>, vector<128x64xbf16>, vector<256x64xf32> -> vector<256x64xf32>
    %7 = arith.addf %3, %6 : vector<256x64xf32>
    %c0_6 = arith.constant 0 : index
    %c0_7 = arith.constant 0 : index
    %8 = vector.load %arg6[%c0_6, %c0_7] : memref<256x64xf32, #tpu.memory_space<vmem>>, vector<256x64xf32>
    tpu.vector_store %arg6[%c0_6, %c0_7], %7 {strides = array<i32>} : memref<256x64xf32, #tpu.memory_space<vmem>>, vector<256x64xf32>,
    %c0_i32_8 = arith.constant 0 : i32
    %9 = arith.cmpi eq, %arg2, %c0_i32_8 : i32
    %10 = arith.extui %9 : i1 to i32
    %c0_i32_9 = arith.constant 0 : i32
    %11 = arith.cmpi ne, %10, %c0_i32_9 : i32
    scf.if %11 {
      %c0_10 = arith.constant 0 : index
      %c0_11 = arith.constant 0 : index
      %12 = vector.load %arg6[%c0_10, %c0_11] : memref<256x64xf32, #tpu.memory_space<vmem>>, vector<256x64xf32>
      %13 = arith.truncf %12 : vector<256x64xf32> to vector<256x64xbf16>
      %c0_12 = arith.constant 0 : index
      %c0_13 = arith.constant 0 : index
      %14 = vector.load %arg5[%c0_12, %c0_13] : memref<256x64xbf16, #tpu.memory_space<vmem>>, vector<256x64xbf16>
      tpu.vector_store %arg5[%c0_12, %c0_13], %13 {strides = array<i32>} : memref<256x64xbf16, #tpu.memory_space<vmem>>, vector<256x64xbf16>,
    } else {
    }
    return
  }
  func.func @transform_0(%arg0: i32, %arg1: i32, %arg2: i32) -> (i32, i32) {
    %c0_i32 = arith.constant 0 : i32
    return %arg0, %arg2 : i32, i32
  }
  func.func @transform_1(%arg0: i32, %arg1: i32, %arg2: i32) -> (i32, i32) {
    %c0_i32 = arith.constant 0 : i32
    return %arg2, %arg1 : i32, i32
  }
  func.func @transform_2(%arg0: i32, %arg1: i32, %arg2: i32) -> (i32, i32) {
    %c0_i32 = arith.constant 0 : i32
    return %arg0, %arg1 : i32, i32
  }
}

</mosaic_0001>

<bundles_post_ra>
// kernel: tpu_custom_call.1
= control target key start
LH: loop header
LB: loop body
LE: loop exit
PB: predicated region body
PF: predicated region fallthrough
CT: control target
= control target key end

     0   :  { %7 = vsyncpa [#allocation3], 0  ;;  %s391_s12 = smov [#allocation2]   ;;  %s392_s14 = smov 128   ;;  %s564_s0 = inlined_call_operand.hbm [shape: f32[256,128], index: 0, kind: input, shape index: {}]   ;;  %s565_s1 = inlined_call_operand.vmem [shape: bf16[128,64], index: 1, kind: input, shape index: {}]   ;;  %s566_s2 = inlined_call_operand.vmem [shape: bf16[256,64], index: 2, kind: output, shape index: {}]  }
   0x1   :  { %s12_s11 = sshll.u32 %s564_s0, 4  ;;  %s14_s13 = sshll.u32 %s391_s12, 4  ;;  %s13_s11 = int_to_ptr.hbm [resolvable:$true] %s12_s11  ;;  %s15_s13 = int_to_ptr.vmem [resolvable:$true] %s14_s13 }
   0x2   :  { %s393_s15 = smov 8  }
   0x3   :  { %20 = dma.hbm_to_vmem [thread:$0]  %s13_s11, 4096, %s15_s13, [#allocation3], %s392_s14, %s392_s14, %s393_s15  }
   0x4   :  { %389 = dma.done.wait [#allocation3], 4096  }
   0x5   :  { %390 = vsyncadd [#allocation3], 4294963200  ;;  %v337_v0 = vld [vmem:[%s565_s1 + $0x38] sm:$0xff]  ;;  %v336_v1 = vld [vmem:[%s565_s1 + $0x30] sm:$0xff]  ;;  %vm260_vm0 = vcmask 519168  }
   0x6   :  { %139 = vmatpush.bf16.msra.mxu0 %v337_v0  ;;  %338 = vmatpush.bf16.msra.mxu1 %v337_v0  ;;  %v335_v2 = vld [vmem:[%s565_s1 + $0x28] sm:$0xff]  ;;  %v334_v3 = vld [vmem:[%s565_s1 + $0x20] sm:$0xff]  ;;  %v333_v4 = vld [vmem:[%s565_s1 + $0x18] sm:$0xff] }
   0x7   :  { %339 = vmatpush.bf16.msra.mxu2 %v337_v0  ;;  %340 = vmatpush.bf16.msra.mxu3 %v337_v0  ;;  %v332_v5 = vld [vmem:[%s565_s1 + $0x10] sm:$0xff]  ;;  %v331_v6 = vld [vmem:[%s565_s1 + $0x8] sm:$0xff]  ;;  %v330_v7 = vld [vmem:[%s565_s1] sm:$0xff] }
   0x8   :  { %v27_v8 = vld [vmem:[#allocation2] sm:$0xff]  ;;  %v28_v9 = vld [vmem:[#allocation2 + $0x8] sm:$0xff]  ;;  %v29_v20 = vld [vmem:[#allocation2 + $0x10] sm:$0xff] }
   0x9   :  { %v35_v10 = vld [vmem:[#allocation2 + $0x40] sm:$0xff]  ;;  %v36_v11 = vld [vmem:[#allocation2 + $0x48] sm:$0xff]  ;;  %v59_v16 = vpack.c.bf16 %v28_v9, %v27_v8  ;;  %v30_v21 = vld [vmem:[#allocation2 + $0x18] sm:$0xff] }
   0xa   :  { %140 = vmatpush.bf16.msra.mxu0 %v336_v1  ;;  %341 = vmatpush.bf16.msra.mxu1 %v336_v1  ;;  %v43_v12 = vld [vmem:[#allocation2 + $0x80] sm:$0xff]  ;;  %v44_v13 = vld [vmem:[#allocation2 + $0x88] sm:$0xff]  ;;  %v63_v17 = vpack.c.bf16 %v36_v11, %v35_v10  ;;  %v37_v22 = vld [vmem:[#allocation2 + $0x50] sm:$0xff]  ;;  %v60_v28 = vpack.c.bf16 %v30_v21, %v29_v20 }
   0xb   :  { %342 = vmatpush.bf16.msra.mxu2 %v336_v1  ;;  %343 = vmatpush.bf16.msra.mxu3 %v336_v1  ;;  %v51_v14 = vld [vmem:[#allocation2 + $0xc0] sm:$0xff]  ;;  %v52_v15 = vld [vmem:[#allocation2 + $0xc8] sm:$0xff]  ;;  %v67_v18 = vpack.c.bf16 %v44_v13, %v43_v12  ;;  %v38_v23 = vld [vmem:[#allocation2 + $0x58] sm:$0xff] }
   0xc   :  { %v71_v19 = vpack.c.bf16 %v52_v15, %v51_v14  ;;  %v45_v24 = vld [vmem:[#allocation2 + $0x90] sm:$0xff]  ;;  %v46_v25 = vld [vmem:[#allocation2 + $0x98] sm:$0xff]  ;;  %v64_v29 = vpack.c.bf16 %v38_v23, %v37_v22  ;;  %v31_v32 = vld [vmem:[#allocation2 + $0x20] sm:$0xff] }
   0xd   :  { %v53_v26 = vld [vmem:[#allocation2 + $0xd0] sm:$0xff]  ;;  %v54_v27 = vld [vmem:[#allocation2 + $0xd8] sm:$0xff]  ;;  %v68_v30 = vpack.c.bf16 %v46_v25, %v45_v24  ;;  %v32_v33 = vld [vmem:[#allocation2 + $0x28] sm:$0xff] }
   0xe   :  { %141 = vmatpush.bf16.msra.mxu0 %v335_v2  ;;  %344 = vmatpush.bf16.msra.mxu1 %v335_v2  ;;  %v72_v31 = vpack.c.bf16 %v54_v27, %v53_v26  ;;  %v39_v34 = vld [vmem:[#allocation2 + $0x60] sm:$0xff]  ;;  %v40_v35 = vld [vmem:[#allocation2 + $0x68] sm:$0xff]  ;;  %v61_v40 = vpack.c.bf16 %v32_v33, %v31_v32  ;;  %v33_v44 = vld [vmem:[#allocation2 + $0x30] sm:$0xff] }
   0xf   :  { %345 = vmatpush.bf16.msra.mxu2 %v335_v2  ;;  %346 = vmatpush.bf16.msra.mxu3 %v335_v2  ;;  %v47_v36 = vld [vmem:[#allocation2 + $0xa0] sm:$0xff]  ;;  %v48_v37 = vld [vmem:[#allocation2 + $0xa8] sm:$0xff]  ;;  %v65_v41 = vpack.c.bf16 %v40_v35, %v39_v34  ;;  %v34_v45 = vld [vmem:[#allocation2 + $0x38] sm:$0xff] }
  0x10   :  { %v55_v38 = vld [vmem:[#allocation2 + $0xe0] sm:$0xff]  ;;  %v56_v39 = vld [vmem:[#allocation2 + $0xe8] sm:$0xff]  ;;  %v69_v42 = vpack.c.bf16 %v48_v37, %v47_v36  ;;  %v41_v46 = vld [vmem:[#allocation2 + $0x70] sm:$0xff]  ;;  %v62_v52 = vpack.c.bf16 %v34_v45, %v33_v44 }
  0x11   :  { %v73_v43 = vpack.c.bf16 %v56_v39, %v55_v38  ;;  %v42_v47 = vld [vmem:[#allocation2 + $0x78] sm:$0xff]  ;;  %v49_v48 = vld [vmem:[#allocation2 + $0xb0] sm:$0xff] }
  0x12   :  { %142 = vmatpush.bf16.msra.mxu0 %v334_v3  ;;  %347 = vmatpush.bf16.msra.mxu1 %v334_v3  ;;  %v50_v49 = vld [vmem:[#allocation2 + $0xb8] sm:$0xff]  ;;  %v57_v50 = vld [vmem:[#allocation2 + $0xf0] sm:$0xff]  ;;  %v66_v53 = vpack.c.bf16 %v42_v47, %v41_v46 }
  0x13   :  { %348 = vmatpush.bf16.msra.mxu2 %v334_v3  ;;  %349 = vmatpush.bf16.msra.mxu3 %v334_v3  ;;  %v58_v51 = vld [vmem:[#allocation2 + $0xf8] sm:$0xff]  ;;  %v70_v54 = vpack.c.bf16 %v50_v49, %v49_v48 }
  0x14   :  { %v74_v55 = vpack.c.bf16 %v58_v51, %v57_v50 }
  0x16   :  { %143 = vmatpush.bf16.msra.mxu0 %v333_v4  ;;  %350 = vmatpush.bf16.msra.mxu1 %v333_v4 }
  0x17   :  { %351 = vmatpush.bf16.msra.mxu2 %v333_v4  ;;  %352 = vmatpush.bf16.msra.mxu3 %v333_v4 }
  0x1a   :  { %144 = vmatpush.bf16.msra.mxu0 %v332_v5  ;;  %353 = vmatpush.bf16.msra.mxu1 %v332_v5 }
  0x1b   :  { %354 = vmatpush.bf16.msra.mxu2 %v332_v5  ;;  %355 = vmatpush.bf16.msra.mxu3 %v332_v5 }
  0x1e   :  { %145 = vmatpush.bf16.msra.mxu0 %v331_v6  ;;  %356 = vmatpush.bf16.msra.mxu1 %v331_v6 }
  0x1f   :  { %357 = vmatpush.bf16.msra.mxu2 %v331_v6  ;;  %358 = vmatpush.bf16.msra.mxu3 %v331_v6 }
  0x22   :  { %146 = vmatpush.bf16.msra.mxu0 %v330_v7  ;;  %359 = vmatpush.bf16.msra.mxu1 %v330_v7 }
  0x23   :  { %360 = vmatpush.bf16.msra.mxu2 %v330_v7  ;;  %361 = vmatpush.bf16.msra.mxu3 %v330_v7 }
  0x25   :  { %147 = vmatmul.bf16.vlgmr.msra.gmra.mxu0 %v59_v16  ;;  %167 = vmatmul.bf16.vlgmr.msra.gmra.mxu1 %v63_v17 }
  0x26   :  { %187 = vmatmul.bf16.vlgmr.msra.gmra.mxu2 %v67_v18  ;;  %207 = vmatmul.bf16.vlgmr.msra.gmra.mxu3 %v71_v19 }
  0x35   :  { %152 = vmatmul.bf16.gmra.mxu0 %v60_v28  ;;  %172 = vmatmul.bf16.gmra.mxu1 %v64_v29 }
  0x36   :  { %192 = vmatmul.bf16.gmra.mxu2 %v68_v30  ;;  %212 = vmatmul.bf16.gmra.mxu3 %v72_v31 }
  0x45   :  { %157 = vmatmul.bf16.gmra.mxu0 %v61_v40  ;;  %177 = vmatmul.bf16.gmra.mxu1 %v65_v41 }
  0x46   :  { %197 = vmatmul.bf16.gmra.mxu2 %v69_v42  ;;  %217 = vmatmul.bf16.gmra.mxu3 %v73_v43 }
  0x55   :  { %162 = vmatmul.bf16.gmra.mxu0 %v62_v52  ;;  %182 = vmatmul.bf16.gmra.mxu1 %v66_v53 }
  0x56   :  { %202 = vmatmul.bf16.gmra.mxu2 %v70_v54  ;;  %222 = vmatmul.bf16.gmra.mxu3 %v74_v55 }
  0xa2   :  { %v148_v56 = vpop.f32.mrf.mxu0  ;;  %v168_v57 = vpop.f32.mrf.mxu1 }
  0xa3   :  { %v228_v58 = vpack.c.bf16 %v148_v56, %v148_v56  ;;  %v236_v59 = vpack.c.bf16 %v168_v57, %v168_v57 }
  0xa5   :  { %261 = vst.msk [vmem:[%s566_s2] sm:$0xf] %vm260_vm0, %v228_v58 }
  0xa6   :  { %269 = vst.msk [vmem:[%s566_s2 + $0x20] sm:$0xf] %vm260_vm0, %v236_v59 }
  0xa9   :  { %v188_v60 = vpop.f32.mrf.mxu2  ;;  %v208_v61 = vpop.f32.mrf.mxu3 }
  0xaa   :  { %v244_v62 = vpack.c.bf16 %v188_v60, %v188_v60  ;;  %v252_v63 = vpack.c.bf16 %v208_v61, %v208_v61  ;;  %v150_v0 = vpop.f32.mrf.mxu0  ;;  %v170_v1 = vpop.f32.mrf.mxu1 }
  0xab   :  { %v229_v2 = vpack.c.bf16 %v150_v0, %v150_v0  ;;  %v237_v3 = vpack.c.bf16 %v170_v1, %v170_v1 }
  0xac   :  { %277 = vst.msk [vmem:[%s566_s2 + $0x40] sm:$0xf] %vm260_vm0, %v244_v62 }
  0xad   :  { %285 = vst.msk [vmem:[%s566_s2 + $0x60] sm:$0xf] %vm260_vm0, %v252_v63 }
  0xae   :  { %262 = vst.msk [vmem:[%s566_s2 + $0x4] sm:$0xf] %vm260_vm0, %v229_v2 }
  0xaf   :  { %270 = vst.msk [vmem:[%s566_s2 + $0x24] sm:$0xf] %vm260_vm0, %v237_v3 }
  0xb1   :  { %v190_v4 = vpop.f32.mrf.mxu2  ;;  %v210_v5 = vpop.f32.mrf.mxu3 }
  0xb2   :  { %v245_v6 = vpack.c.bf16 %v190_v4, %v190_v4  ;;  %v253_v7 = vpack.c.bf16 %v210_v5, %v210_v5  ;;  %v153_v8 = vpop.f32.mrf.mxu0  ;;  %v173_v9 = vpop.f32.mrf.mxu1 }
  0xb3   :  { %v230_v10 = vpack.c.bf16 %v153_v8, %v153_v8  ;;  %v238_v11 = vpack.c.bf16 %v173_v9, %v173_v9 }
  0xb4   :  { %278 = vst.msk [vmem:[%s566_s2 + $0x44] sm:$0xf] %vm260_vm0, %v245_v6 }
  0xb5   :  { %286 = vst.msk [vmem:[%s566_s2 + $0x64] sm:$0xf] %vm260_vm0, %v253_v7 }
  0xb6   :  { %263 = vst.msk [vmem:[%s566_s2 + $0x8] sm:$0xf] %vm260_vm0, %v230_v10 }
  0xb7   :  { %271 = vst.msk [vmem:[%s566_s2 + $0x28] sm:$0xf] %vm260_vm0, %v238_v11 }
  0xb9   :  { %v193_v12 = vpop.f32.mrf.mxu2  ;;  %v213_v13 = vpop.f32.mrf.mxu3 }
  0xba   :  { %v246_v14 = vpack.c.bf16 %v193_v12, %v193_v12  ;;  %v254_v15 = vpack.c.bf16 %v213_v13, %v213_v13  ;;  %v155_v16 = vpop.f32.mrf.mxu0  ;;  %v175_v17 = vpop.f32.mrf.mxu1 }
  0xbb   :  { %v231_v18 = vpack.c.bf16 %v155_v16, %v155_v16  ;;  %v239_v19 = vpack.c.bf16 %v175_v17, %v175_v17 }
  0xbc   :  { %279 = vst.msk [vmem:[%s566_s2 + $0x48] sm:$0xf] %vm260_vm0, %v246_v14 }
  0xbd   :  { %287 = vst.msk [vmem:[%s566_s2 + $0x68] sm:$0xf] %vm260_vm0, %v254_v15 }
  0xbe   :  { %264 = vst.msk [vmem:[%s566_s2 + $0xc] sm:$0xf] %vm260_vm0, %v231_v18 }
  0xbf   :  { %272 = vst.msk [vmem:[%s566_s2 + $0x2c] sm:$0xf] %vm260_vm0, %v239_v19 }
  0xc1   :  { %v195_v20 = vpop.f32.mrf.mxu2  ;;  %v215_v21 = vpop.f32.mrf.mxu3 }
  0xc2   :  { %v247_v22 = vpack.c.bf16 %v195_v20, %v195_v20  ;;  %v255_v23 = vpack.c.bf16 %v215_v21, %v215_v21  ;;  %v158_v24 = vpop.f32.mrf.mxu0  ;;  %v178_v25 = vpop.f32.mrf.mxu1 }
  0xc3   :  { %v232_v26 = vpack.c.bf16 %v158_v24, %v158_v24  ;;  %v240_v27 = vpack.c.bf16 %v178_v25, %v178_v25 }
  0xc4   :  { %280 = vst.msk [vmem:[%s566_s2 + $0x4c] sm:$0xf] %vm260_vm0, %v247_v22 }
  0xc5   :  { %288 = vst.msk [vmem:[%s566_s2 + $0x6c] sm:$0xf] %vm260_vm0, %v255_v23 }
  0xc6   :  { %265 = vst.msk [vmem:[%s566_s2 + $0x10] sm:$0xf] %vm260_vm0, %v232_v26 }
  0xc7   :  { %273 = vst.msk [vmem:[%s566_s2 + $0x30] sm:$0xf] %vm260_vm0, %v240_v27 }
  0xc9   :  { %v198_v28 = vpop.f32.mrf.mxu2  ;;  %v218_v29 = vpop.f32.mrf.mxu3 }
  0xca   :  { %v248_v30 = vpack.c.bf16 %v198_v28, %v198_v28  ;;  %v256_v31 = vpack.c.bf16 %v218_v29, %v218_v29  ;;  %v160_v32 = vpop.f32.mrf.mxu0  ;;  %v180_v33 = vpop.f32.mrf.mxu1 }
  0xcb   :  { %v233_v34 = vpack.c.bf16 %v160_v32, %v160_v32  ;;  %v241_v35 = vpack.c.bf16 %v180_v33, %v180_v33 }
  0xcc   :  { %281 = vst.msk [vmem:[%s566_s2 + $0x50] sm:$0xf] %vm260_vm0, %v248_v30 }
  0xcd   :  { %289 = vst.msk [vmem:[%s566_s2 + $0x70] sm:$0xf] %vm260_vm0, %v256_v31 }
  0xce   :  { %266 = vst.msk [vmem:[%s566_s2 + $0x14] sm:$0xf] %vm260_vm0, %v233_v34 }
  0xcf   :  { %274 = vst.msk [vmem:[%s566_s2 + $0x34] sm:$0xf] %vm260_vm0, %v241_v35 }
  0xd1   :  { %v200_v36 = vpop.f32.mrf.mxu2  ;;  %v220_v37 = vpop.f32.mrf.mxu3 }
  0xd2   :  { %v249_v38 = vpack.c.bf16 %v200_v36, %v200_v36  ;;  %v257_v39 = vpack.c.bf16 %v220_v37, %v220_v37  ;;  %v163_v40 = vpop.f32.mrf.mxu0  ;;  %v183_v41 = vpop.f32.mrf.mxu1 }
  0xd3   :  { %v234_v42 = vpack.c.bf16 %v163_v40, %v163_v40  ;;  %v242_v43 = vpack.c.bf16 %v183_v41, %v183_v41 }
  0xd4   :  { %282 = vst.msk [vmem:[%s566_s2 + $0x54] sm:$0xf] %vm260_vm0, %v249_v38 }
  0xd5   :  { %290 = vst.msk [vmem:[%s566_s2 + $0x74] sm:$0xf] %vm260_vm0, %v257_v39 }
  0xd6   :  { %267 = vst.msk [vmem:[%s566_s2 + $0x18] sm:$0xf] %vm260_vm0, %v234_v42 }
  0xd7   :  { %275 = vst.msk [vmem:[%s566_s2 + $0x38] sm:$0xf] %vm260_vm0, %v242_v43 }
  0xd9   :  { %v203_v44 = vpop.f32.mrf.mxu2  ;;  %v223_v45 = vpop.f32.mrf.mxu3 }
  0xda   :  { %v250_v46 = vpack.c.bf16 %v203_v44, %v203_v44  ;;  %v258_v47 = vpack.c.bf16 %v223_v45, %v223_v45  ;;  %v165_v48 = vpop.f32.mrf.mxu0  ;;  %v185_v49 = vpop.f32.mrf.mxu1 }
  0xdb   :  { %v235_v50 = vpack.c.bf16 %v165_v48, %v165_v48  ;;  %v243_v51 = vpack.c.bf16 %v185_v49, %v185_v49 }
  0xdc   :  { %283 = vst.msk [vmem:[%s566_s2 + $0x58] sm:$0xf] %vm260_vm0, %v250_v46 }
  0xdd   :  { %291 = vst.msk [vmem:[%s566_s2 + $0x78] sm:$0xf] %vm260_vm0, %v258_v47 }
  0xde   :  { %268 = vst.msk [vmem:[%s566_s2 + $0x1c] sm:$0xf] %vm260_vm0, %v235_v50 }
  0xdf   :  { %276 = vst.msk [vmem:[%s566_s2 + $0x3c] sm:$0xf] %vm260_vm0, %v243_v51 }
  0xe1   :  { %v205_v52 = vpop.f32.mrf.mxu2  ;;  %v225_v53 = vpop.f32.mrf.mxu3 }
  0xe2   :  { %v251_v54 = vpack.c.bf16 %v205_v52, %v205_v52  ;;  %v259_v55 = vpack.c.bf16 %v225_v53, %v225_v53 }
  0xe4   :  { %284 = vst.msk [vmem:[%s566_s2 + $0x5c] sm:$0xf] %vm260_vm0, %v251_v54 }
  0xe5   :  { %292 = vst.msk [vmem:[%s566_s2 + $0x7c] sm:$0xf] %vm260_vm0, %v259_v55 }
  0xe6   :  { %297 = vsyncpa [#allocation3], 1 }

// kernel: tpu_custom_call.1
= control target key start
LH: loop header
LB: loop body
LE: loop exit
PB: predicated region body
PF: predicated region fallthrough
CT: control target
= control target key end

     0   :  { %7 = vsyncpa [#allocation3], 0  ;;  %s391_s12 = smov [#allocation2]   ;;  %s392_s14 = smov 128   ;;  %s564_s0 = inlined_call_operand.hbm [shape: f32[256,128], index: 0, kind: input, shape index: {}]   ;;  %s565_s1 = inlined_call_operand.vmem [shape: bf16[128,64], index: 1, kind: input, shape index: {}]   ;;  %s566_s2 = inlined_call_operand.vmem [shape: bf16[256,64], index: 2, kind: output, shape index: {}]  }
   0x1   :  { %s12_s11 = sshll.u32 %s564_s0, 4  ;;  %s14_s13 = sshll.u32 %s391_s12, 4  ;;  %s13_s11 = int_to_ptr.hbm [resolvable:$true] %s12_s11  ;;  %s15_s13 = int_to_ptr.vmem [resolvable:$true] %s14_s13 }
   0x2   :  { %s393_s15 = smov 8  }
   0x3   :  { %20 = dma.hbm_to_vmem [thread:$0]  %s13_s11, 4096, %s15_s13, [#allocation3], %s392_s14, %s392_s14, %s393_s15  }
   0x4   :  { %389 = dma.done.wait [#allocation3], 4096  }
   0x5   :  { %390 = vsyncadd [#allocation3], 4294963200  ;;  %v337_v0 = vld [vmem:[%s565_s1 + $0x38] sm:$0xff]  ;;  %v336_v1 = vld [vmem:[%s565_s1 + $0x30] sm:$0xff]  ;;  %vm260_vm0 = vcmask 519168  }
   0x6   :  { %139 = vmatpush.bf16.msra.mxu0 %v337_v0  ;;  %338 = vmatpush.bf16.msra.mxu1 %v337_v0  ;;  %v335_v2 = vld [vmem:[%s565_s1 + $0x28] sm:$0xff]  ;;  %v334_v3 = vld [vmem:[%s565_s1 + $0x20] sm:$0xff]  ;;  %v333_v4 = vld [vmem:[%s565_s1 + $0x18] sm:$0xff] }
   0x7   :  { %339 = vmatpush.bf16.msra.mxu2 %v337_v0  ;;  %340 = vmatpush.bf16.msra.mxu3 %v337_v0  ;;  %v332_v5 = vld [vmem:[%s565_s1 + $0x10] sm:$0xff]  ;;  %v331_v6 = vld [vmem:[%s565_s1 + $0x8] sm:$0xff]  ;;  %v330_v7 = vld [vmem:[%s565_s1] sm:$0xff] }
   0x8   :  { %v27_v8 = vld [vmem:[#allocation2] sm:$0xff]  ;;  %v28_v9 = vld [vmem:[#allocation2 + $0x8] sm:$0xff]  ;;  %v29_v20 = vld [vmem:[#allocation2 + $0x10] sm:$0xff] }
   0x9   :  { %v35_v10 = vld [vmem:[#allocation2 + $0x40] sm:$0xff]  ;;  %v36_v11 = vld [vmem:[#allocation2 + $0x48] sm:$0xff]  ;;  %v59_v16 = vpack.c.bf16 %v28_v9, %v27_v8  ;;  %v30_v21 = vld [vmem:[#allocation2 + $0x18] sm:$0xff] }
   0xa   :  { %140 = vmatpush.bf16.msra.mxu0 %v336_v1  ;;  %341 = vmatpush.bf16.msra.mxu1 %v336_v1  ;;  %v43_v12 = vld [vmem:[#allocation2 + $0x80] sm:$0xff]  ;;  %v44_v13 = vld [vmem:[#allocation2 + $0x88] sm:$0xff]  ;;  %v63_v17 = vpack.c.bf16 %v36_v11, %v35_v10  ;;  %v37_v22 = vld [vmem:[#allocation2 + $0x50] sm:$0xff]  ;;  %v60_v28 = vpack.c.bf16 %v30_v21, %v29_v20 }
   0xb   :  { %342 = vmatpush.bf16.msra.mxu2 %v336_v1  ;;  %343 = vmatpush.bf16.msra.mxu3 %v336_v1  ;;  %v51_v14 = vld [vmem:[#allocation2 + $0xc0] sm:$0xff]  ;;  %v52_v15 = vld [vmem:[#allocation2 + $0xc8] sm:$0xff]  ;;  %v67_v18 = vpack.c.bf16 %v44_v13, %v43_v12  ;;  %v38_v23 = vld [vmem:[#allocation2 + $0x58] sm:$0xff] }
   0xc   :  { %v71_v19 = vpack.c.bf16 %v52_v15, %v51_v14  ;;  %v45_v24 = vld [vmem:[#allocation2 + $0x90] sm:$0xff]  ;;  %v46_v25 = vld [vmem:[#allocation2 + $0x98] sm:$0xff]  ;;  %v64_v29 = vpack.c.bf16 %v38_v23, %v37_v22  ;;  %v31_v32 = vld [vmem:[#allocation2 + $0x20] sm:$0xff] }
   0xd   :  { %v53_v26 = vld [vmem:[#allocation2 + $0xd0] sm:$0xff]  ;;  %v54_v27 = vld [vmem:[#allocation2 + $0xd8] sm:$0xff]  ;;  %v68_v30 = vpack.c.bf16 %v46_v25, %v45_v24  ;;  %v32_v33 = vld [vmem:[#allocation2 + $0x28] sm:$0xff] }
   0xe   :  { %141 = vmatpush.bf16.msra.mxu0 %v335_v2  ;;  %344 = vmatpush.bf16.msra.mxu1 %v335_v2  ;;  %v72_v31 = vpack.c.bf16 %v54_v27, %v53_v26  ;;  %v39_v34 = vld [vmem:[#allocation2 + $0x60] sm:$0xff]  ;;  %v40_v35 = vld [vmem:[#allocation2 + $0x68] sm:$0xff]  ;;  %v61_v40 = vpack.c.bf16 %v32_v33, %v31_v32  ;;  %v33_v44 = vld [vmem:[#allocation2 + $0x30] sm:$0xff] }
   0xf   :  { %345 = vmatpush.bf16.msra.mxu2 %v335_v2  ;;  %346 = vmatpush.bf16.msra.mxu3 %v335_v2  ;;  %v47_v36 = vld [vmem:[#allocation2 + $0xa0] sm:$0xff]  ;;  %v48_v37 = vld [vmem:[#allocation2 + $0xa8] sm:$0xff]  ;;  %v65_v41 = vpack.c.bf16 %v40_v35, %v39_v34  ;;  %v34_v45 = vld [vmem:[#allocation2 + $0x38] sm:$0xff] }
  0x10   :  { %v55_v38 = vld [vmem:[#allocation2 + $0xe0] sm:$0xff]  ;;  %v56_v39 = vld [vmem:[#allocation2 + $0xe8] sm:$0xff]  ;;  %v69_v42 = vpack.c.bf16 %v48_v37, %v47_v36  ;;  %v41_v46 = vld [vmem:[#allocation2 + $0x70] sm:$0xff]  ;;  %v62_v52 = vpack.c.bf16 %v34_v45, %v33_v44 }
  0x11   :  { %v73_v43 = vpack.c.bf16 %v56_v39, %v55_v38  ;;  %v42_v47 = vld [vmem:[#allocation2 + $0x78] sm:$0xff]  ;;  %v49_v48 = vld [vmem:[#allocation2 + $0xb0] sm:$0xff] }
  0x12   :  { %142 = vmatpush.bf16.msra.mxu0 %v334_v3  ;;  %347 = vmatpush.bf16.msra.mxu1 %v334_v3  ;;  %v50_v49 = vld [vmem:[#allocation2 + $0xb8] sm:$0xff]  ;;  %v57_v50 = vld [vmem:[#allocation2 + $0xf0] sm:$0xff]  ;;  %v66_v53 = vpack.c.bf16 %v42_v47, %v41_v46 }
  0x13   :  { %348 = vmatpush.bf16.msra.mxu2 %v334_v3  ;;  %349 = vmatpush.bf16.msra.mxu3 %v334_v3  ;;  %v58_v51 = vld [vmem:[#allocation2 + $0xf8] sm:$0xff]  ;;  %v70_v54 = vpack.c.bf16 %v50_v49, %v49_v48 }
  0x14   :  { %v74_v55 = vpack.c.bf16 %v58_v51, %v57_v50 }
  0x16   :  { %143 = vmatpush.bf16.msra.mxu0 %v333_v4  ;;  %350 = vmatpush.bf16.msra.mxu1 %v333_v4 }
  0x17   :  { %351 = vmatpush.bf16.msra.mxu2 %v333_v4  ;;  %352 = vmatpush.bf16.msra.mxu3 %v333_v4 }
  0x1a   :  { %144 = vmatpush.bf16.msra.mxu0 %v332_v5  ;;  %353 = vmatpush.bf16.msra.mxu1 %v332_v5 }
  0x1b   :  { %354 = vmatpush.bf16.msra.mxu2 %v332_v5  ;;  %355 = vmatpush.bf16.msra.mxu3 %v332_v5 }
  0x1e   :  { %145 = vmatpush.bf16.msra.mxu0 %v331_v6  ;;  %356 = vmatpush.bf16.msra.mxu1 %v331_v6 }
  0x1f   :  { %357 = vmatpush.bf16.msra.mxu2 %v331_v6  ;;  %358 = vmatpush.bf16.msra.mxu3 %v331_v6 }
  0x22   :  { %146 = vmatpush.bf16.msra.mxu0 %v330_v7  ;;  %359 = vmatpush.bf16.msra.mxu1 %v330_v7 }
  0x23   :  { %360 = vmatpush.bf16.msra.mxu2 %v330_v7  ;;  %361 = vmatpush.bf16.msra.mxu3 %v330_v7 }
  0x25   :  { %147 = vmatmul.bf16.vlgmr.msra.gmra.mxu0 %v59_v16  ;;  %167 = vmatmul.bf16.vlgmr.msra.gmra.mxu1 %v63_v17 }
  0x26   :  { %187 = vmatmul.bf16.vlgmr.msra.gmra.mxu2 %v67_v18  ;;  %207 = vmatmul.bf16.vlgmr.msra.gmra.mxu3 %v71_v19 }
  0x35   :  { %152 = vmatmul.bf16.gmra.mxu0 %v60_v28  ;;  %172 = vmatmul.bf16.gmra.mxu1 %v64_v29 }
  0x36   :  { %192 = vmatmul.bf16.gmra.mxu2 %v68_v30  ;;  %212 = vmatmul.bf16.gmra.mxu3 %v72_v31 }
  0x45   :  { %157 = vmatmul.bf16.gmra.mxu0 %v61_v40  ;;  %177 = vmatmul.bf16.gmra.mxu1 %v65_v41 }
  0x46   :  { %197 = vmatmul.bf16.gmra.mxu2 %v69_v42  ;;  %217 = vmatmul.bf16.gmra.mxu3 %v73_v43 }
  0x55   :  { %162 = vmatmul.bf16.gmra.mxu0 %v62_v52  ;;  %182 = vmatmul.bf16.gmra.mxu1 %v66_v53 }
  0x56   :  { %202 = vmatmul.bf16.gmra.mxu2 %v70_v54  ;;  %222 = vmatmul.bf16.gmra.mxu3 %v74_v55 }
  0xa2   :  { %v148_v56 = vpop.f32.mrf.mxu0  ;;  %v168_v57 = vpop.f32.mrf.mxu1 }
  0xa3   :  { %v228_v58 = vpack.c.bf16 %v148_v56, %v148_v56  ;;  %v236_v59 = vpack.c.bf16 %v168_v57, %v168_v57 }
  0xa5   :  { %261 = vst.msk [vmem:[%s566_s2] sm:$0xf] %vm260_vm0, %v228_v58 }
  0xa6   :  { %269 = vst.msk [vmem:[%s566_s2 + $0x20] sm:$0xf] %vm260_vm0, %v236_v59 }
  0xa9   :  { %v188_v60 = vpop.f32.mrf.mxu2  ;;  %v208_v61 = vpop.f32.mrf.mxu3 }
  0xaa   :  { %v244_v62 = vpack.c.bf16 %v188_v60, %v188_v60  ;;  %v252_v63 = vpack.c.bf16 %v208_v61, %v208_v61  ;;  %v150_v0 = vpop.f32.mrf.mxu0  ;;  %v170_v1 = vpop.f32.mrf.mxu1 }
  0xab   :  { %v229_v2 = vpack.c.bf16 %v150_v0, %v150_v0  ;;  %v237_v3 = vpack.c.bf16 %v170_v1, %v170_v1 }
  0xac   :  { %277 = vst.msk [vmem:[%s566_s2 + $0x40] sm:$0xf] %vm260_vm0, %v244_v62 }
  0xad   :  { %285 = vst.msk [vmem:[%s566_s2 + $0x60] sm:$0xf] %vm260_vm0, %v252_v63 }
  0xae   :  { %262 = vst.msk [vmem:[%s566_s2 + $0x4] sm:$0xf] %vm260_vm0, %v229_v2 }
  0xaf   :  { %270 = vst.msk [vmem:[%s566_s2 + $0x24] sm:$0xf] %vm260_vm0, %v237_v3 }
  0xb1   :  { %v190_v4 = vpop.f32.mrf.mxu2  ;;  %v210_v5 = vpop.f32.mrf.mxu3 }
  0xb2   :  { %v245_v6 = vpack.c.bf16 %v190_v4, %v190_v4  ;;  %v253_v7 = vpack.c.bf16 %v210_v5, %v210_v5  ;;  %v153_v8 = vpop.f32.mrf.mxu0  ;;  %v173_v9 = vpop.f32.mrf.mxu1 }
  0xb3   :  { %v230_v10 = vpack.c.bf16 %v153_v8, %v153_v8  ;;  %v238_v11 = vpack.c.bf16 %v173_v9, %v173_v9 }
  0xb4   :  { %278 = vst.msk [vmem:[%s566_s2 + $0x44] sm:$0xf] %vm260_vm0, %v245_v6 }
  0xb5   :  { %286 = vst.msk [vmem:[%s566_s2 + $0x64] sm:$0xf] %vm260_vm0, %v253_v7 }
  0xb6   :  { %263 = vst.msk [vmem:[%s566_s2 + $0x8] sm:$0xf] %vm260_vm0, %v230_v10 }
  0xb7   :  { %271 = vst.msk [vmem:[%s566_s2 + $0x28] sm:$0xf] %vm260_vm0, %v238_v11 }
  0xb9   :  { %v193_v12 = vpop.f32.mrf.mxu2  ;;  %v213_v13 = vpop.f32.mrf.mxu3 }
  0xba   :  { %v246_v14 = vpack.c.bf16 %v193_v12, %v193_v12  ;;  %v254_v15 = vpack.c.bf16 %v213_v13, %v213_v13  ;;  %v155_v16 = vpop.f32.mrf.mxu0  ;;  %v175_v17 = vpop.f32.mrf.mxu1 }
  0xbb   :  { %v231_v18 = vpack.c.bf16 %v155_v16, %v155_v16  ;;  %v239_v19 = vpack.c.bf16 %v175_v17, %v175_v17 }
  0xbc   :  { %279 = vst.msk [vmem:[%s566_s2 + $0x48] sm:$0xf] %vm260_vm0, %v246_v14 }
  0xbd   :  { %287 = vst.msk [vmem:[%s566_s2 + $0x68] sm:$0xf] %vm260_vm0, %v254_v15 }
  0xbe   :  { %264 = vst.msk [vmem:[%s566_s2 + $0xc] sm:$0xf] %vm260_vm0, %v231_v18 }
  0xbf   :  { %272 = vst.msk [vmem:[%s566_s2 + $0x2c] sm:$0xf] %vm260_vm0, %v239_v19 }
  0xc1   :  { %v195_v20 = vpop.f32.mrf.mxu2  ;;  %v215_v21 = vpop.f32.mrf.mxu3 }
  0xc2   :  { %v247_v22 = vpack.c.bf16 %v195_v20, %v195_v20  ;;  %v255_v23 = vpack.c.bf16 %v215_v21, %v215_v21  ;;  %v158_v24 = vpop.f32.mrf.mxu0  ;;  %v178_v25 = vpop.f32.mrf.mxu1 }
  0xc3   :  { %v232_v26 = vpack.c.bf16 %v158_v24, %v158_v24  ;;  %v240_v27 = vpack.c.bf16 %v178_v25, %v178_v25 }
  0xc4   :  { %280 = vst.msk [vmem:[%s566_s2 + $0x4c] sm:$0xf] %vm260_vm0, %v247_v22 }
  0xc5   :  { %288 = vst.msk [vmem:[%s566_s2 + $0x6c] sm:$0xf] %vm260_vm0, %v255_v23 }
  0xc6   :  { %265 = vst.msk [vmem:[%s566_s2 + $0x10] sm:$0xf] %vm260_vm0, %v232_v26 }
  0xc7   :  { %273 = vst.msk [vmem:[%s566_s2 + $0x30] sm:$0xf] %vm260_vm0, %v240_v27 }
  0xc9   :  { %v198_v28 = vpop.f32.mrf.mxu2  ;;  %v218_v29 = vpop.f32.mrf.mxu3 }
  0xca   :  { %v248_v30 = vpack.c.bf16 %v198_v28, %v198_v28  ;;  %v256_v31 = vpack.c.bf16 %v218_v29, %v218_v29  ;;  %v160_v32 = vpop.f32.mrf.mxu0  ;;  %v180_v33 = vpop.f32.mrf.mxu1 }
  0xcb   :  { %v233_v34 = vpack.c.bf16 %v160_v32, %v160_v32  ;;  %v241_v35 = vpack.c.bf16 %v180_v33, %v180_v33 }
  0xcc   :  { %281 = vst.msk [vmem:[%s566_s2 + $0x50] sm:$0xf] %vm260_vm0, %v248_v30 }
  0xcd   :  { %289 = vst.msk [vmem:[%s566_s2 + $0x70] sm:$0xf] %vm260_vm0, %v256_v31 }
  0xce   :  { %266 = vst.msk [vmem:[%s566_s2 + $0x14] sm:$0xf] %vm260_vm0, %v233_v34 }
  0xcf   :  { %274 = vst.msk [vmem:[%s566_s2 + $0x34] sm:$0xf] %vm260_vm0, %v241_v35 }
  0xd1   :  { %v200_v36 = vpop.f32.mrf.mxu2  ;;  %v220_v37 = vpop.f32.mrf.mxu3 }
  0xd2   :  { %v249_v38 = vpack.c.bf16 %v200_v36, %v200_v36  ;;  %v257_v39 = vpack.c.bf16 %v220_v37, %v220_v37  ;;  %v163_v40 = vpop.f32.mrf.mxu0  ;;  %v183_v41 = vpop.f32.mrf.mxu1 }
  0xd3   :  { %v234_v42 = vpack.c.bf16 %v163_v40, %v163_v40  ;;  %v242_v43 = vpack.c.bf16 %v183_v41, %v183_v41 }
  0xd4   :  { %282 = vst.msk [vmem:[%s566_s2 + $0x54] sm:$0xf] %vm260_vm0, %v249_v38 }
  0xd5   :  { %290 = vst.msk [vmem:[%s566_s2 + $0x74] sm:$0xf] %vm260_vm0, %v257_v39 }
  0xd6   :  { %267 = vst.msk [vmem:[%s566_s2 + $0x18] sm:$0xf] %vm260_vm0, %v234_v42 }
  0xd7   :  { %275 = vst.msk [vmem:[%s566_s2 + $0x38] sm:$0xf] %vm260_vm0, %v242_v43 }
  0xd9   :  { %v203_v44 = vpop.f32.mrf.mxu2  ;;  %v223_v45 = vpop.f32.mrf.mxu3 }
  0xda   :  { %v250_v46 = vpack.c.bf16 %v203_v44, %v203_v44  ;;  %v258_v47 = vpack.c.bf16 %v223_v45, %v223_v45  ;;  %v165_v48 = vpop.f32.mrf.mxu0  ;;  %v185_v49 = vpop.f32.mrf.mxu1 }
  0xdb   :  { %v235_v50 = vpack.c.bf16 %v165_v48, %v165_v48  ;;  %v243_v51 = vpack.c.bf16 %v185_v49, %v185_v49 }
  0xdc   :  { %283 = vst.msk [vmem:[%s566_s2 + $0x58] sm:$0xf] %vm260_vm0, %v250_v46 }
  0xdd   :  { %291 = vst.msk [vmem:[%s566_s2 + $0x78] sm:$0xf] %vm260_vm0, %v258_v47 }
  0xde   :  { %268 = vst.msk [vmem:[%s566_s2 + $0x1c] sm:$0xf] %vm260_vm0, %v235_v50 }
  0xdf   :  { %276 = vst.msk [vmem:[%s566_s2 + $0x3c] sm:$0xf] %vm260_vm0, %v243_v51 }
  0xe1   :  { %v205_v52 = vpop.f32.mrf.mxu2  ;;  %v225_v53 = vpop.f32.mrf.mxu3 }
  0xe2   :  { %v251_v54 = vpack.c.bf16 %v205_v52, %v205_v52  ;;  %v259_v55 = vpack.c.bf16 %v225_v53, %v225_v53 }
  0xe4   :  { %284 = vst.msk [vmem:[%s566_s2 + $0x5c] sm:$0xf] %vm260_vm0, %v251_v54 }
  0xe5   :  { %292 = vst.msk [vmem:[%s566_s2 + $0x7c] sm:$0xf] %vm260_vm0, %v259_v55 }
  0xe6   :  { %297 = vsyncpa [#allocation3], 1 }

// kernel: tpu_custom_call.1
= control target key start
LH: loop header
LB: loop body
LE: loop exit
PB: predicated region body
PF: predicated region fallthrough
CT: control target
= control target key end

     0   :  { %7 = vsyncpa [#allocation4], 0  ;;  %s721_s12 = smov [#allocation3]   ;;  %s722_s14 = smov 64   ;;  %s959_s0 = inlined_call_operand.hbm [shape: bf16[256,128], index: 0, kind: input, shape index: {}]   ;;  %s960_s1 = inlined_call_operand.vmem [shape: bf16[128,64], index: 1, kind: input, shape index: {}]   ;;  %s961_s2 = inlined_call_operand.vmem [shape: bf16[256,64], index: 2, kind: output, shape index: {}]  }
   0x1   :  { %s12_s11 = sshll.u32 %s959_s0, 4  ;;  %s14_s13 = sshll.u32 %s721_s12, 4  ;;  %s13_s11 = int_to_ptr.hbm [resolvable:$true] %s12_s11  ;;  %s15_s13 = int_to_ptr.vmem [resolvable:$true] %s14_s13 }
   0x2   :  { %s723_s15 = smov 4  }
   0x3   :  { %20 = dma.hbm_to_vmem [thread:$0]  %s13_s11, 2048, %s15_s13, [#allocation4], %s722_s14, %s722_s14, %s723_s15  }
   0x4   :  { %719 = dma.done.wait [#allocation4], 2048  }
   0x5   :  { %720 = vsyncadd [#allocation4], 4294965248  ;;  %v666_v0 = vld [vmem:[%s960_s1 + $0x38] sm:$0xff]  ;;  %v665_v1 = vld [vmem:[%s960_s1 + $0x30] sm:$0xff]  ;;  %vm31_vm0 = vcmask 523264   ;;  %v724_v16 = vmov 0.0  }
   0x6   :  { %288 = vmatpush.bf16.msra.mxu0 %v666_v0  ;;  %667 = vmatpush.bf16.msra.mxu1 %v666_v0  ;;  %v664_v2 = vld [vmem:[%s960_s1 + $0x28] sm:$0xff]  ;;  %v663_v3 = vld [vmem:[%s960_s1 + $0x20] sm:$0xff]  ;;  %v662_v4 = vld [vmem:[%s960_s1 + $0x18] sm:$0xff]  ;;  %32 = vst.msk [vmem:[#allocation2] sm:$0xff] %vm31_vm0, %v724_v16  ;;  %vm509_vm1 = vcmask 519168  }
   0x7   :  { %668 = vmatpush.bf16.msra.mxu2 %v666_v0  ;;  %669 = vmatpush.bf16.msra.mxu3 %v666_v0  ;;  %v661_v5 = vld [vmem:[%s960_s1 + $0x10] sm:$0xff]  ;;  %v660_v6 = vld [vmem:[%s960_s1 + $0x8] sm:$0xff]  ;;  %v659_v7 = vld [vmem:[%s960_s1] sm:$0xff]  ;;  %33 = vst.msk [vmem:[#allocation2 + $0x8] sm:$0xff] %vm31_vm0, %v724_v16 }
   0x8   :  { %v643_v8 = vld [vmem:[#allocation3] sm:$0xff]  ;;  %v644_v12 = vld [vmem:[#allocation3 + $0x8] sm:$0xff]  ;;  %34 = vst.msk [vmem:[#allocation2 + $0x10] sm:$0xff] %vm31_vm0, %v724_v16  ;;  %v645_v17 = vld [vmem:[#allocation3 + $0x10] sm:$0xff] }
   0x9   :  { %v647_v9 = vld [vmem:[#allocation3 + $0x20] sm:$0xff]  ;;  %v648_v13 = vld [vmem:[#allocation3 + $0x28] sm:$0xff]  ;;  %35 = vst.msk [vmem:[#allocation2 + $0x18] sm:$0xff] %vm31_vm0, %v724_v16  ;;  %v649_v18 = vld [vmem:[#allocation3 + $0x30] sm:$0xff] }
   0xa   :  { %289 = vmatpush.bf16.msra.mxu0 %v665_v1  ;;  %670 = vmatpush.bf16.msra.mxu1 %v665_v1  ;;  %v651_v10 = vld [vmem:[#allocation3 + $0x40] sm:$0xff]  ;;  %v652_v14 = vld [vmem:[#allocation3 + $0x48] sm:$0xff]  ;;  %36 = vst.msk [vmem:[#allocation2 + $0x20] sm:$0xff] %vm31_vm0, %v724_v16  ;;  %v653_v19 = vld [vmem:[#allocation3 + $0x50] sm:$0xff] }
   0xb   :  { %671 = vmatpush.bf16.msra.mxu2 %v665_v1  ;;  %672 = vmatpush.bf16.msra.mxu3 %v665_v1  ;;  %v655_v11 = vld [vmem:[#allocation3 + $0x60] sm:$0xff]  ;;  %v656_v15 = vld [vmem:[#allocation3 + $0x68] sm:$0xff]  ;;  %37 = vst.msk [vmem:[#allocation2 + $0x28] sm:$0xff] %vm31_vm0, %v724_v16  ;;  %v657_v20 = vld [vmem:[#allocation3 + $0x70] sm:$0xff] }
   0xc   :  { %38 = vst.msk [vmem:[#allocation2 + $0x30] sm:$0xff] %vm31_vm0, %v724_v16  ;;  %v646_v21 = vld [vmem:[#allocation3 + $0x18] sm:$0xff] }
   0xd   :  { %39 = vst.msk [vmem:[#allocation2 + $0x38] sm:$0xff] %vm31_vm0, %v724_v16  ;;  %v650_v22 = vld [vmem:[#allocation3 + $0x38] sm:$0xff]  ;;  %v64_v25 = vld [vmem:[#allocation2] sm:$0xff] }
   0xe   :  { %290 = vmatpush.bf16.msra.mxu0 %v664_v2  ;;  %673 = vmatpush.bf16.msra.mxu1 %v664_v2  ;;  %40 = vst.msk [vmem:[#allocation2 + $0x40] sm:$0xff] %vm31_vm0, %v724_v16  ;;  %v654_v23 = vld [vmem:[#allocation3 + $0x58] sm:$0xff]  ;;  %v65_v33 = vld [vmem:[#allocation2 + $0x8] sm:$0xff] }
   0xf   :  { %674 = vmatpush.bf16.msra.mxu2 %v664_v2  ;;  %675 = vmatpush.bf16.msra.mxu3 %v664_v2  ;;  %41 = vst.msk [vmem:[#allocation2 + $0x48] sm:$0xff] %vm31_vm0, %v724_v16  ;;  %v658_v24 = vld [vmem:[#allocation3 + $0x78] sm:$0xff]  ;;  %v66_v53 = vld [vmem:[#allocation2 + $0x10] sm:$0xff] }
  0x10   :  { %42 = vst.msk [vmem:[#allocation2 + $0x50] sm:$0xff] %vm31_vm0, %v724_v16 }
  0x11   :  { %43 = vst.msk [vmem:[#allocation2 + $0x58] sm:$0xff] %vm31_vm0, %v724_v16 }
  0x12   :  { %291 = vmatpush.bf16.msra.mxu0 %v663_v3  ;;  %676 = vmatpush.bf16.msra.mxu1 %v663_v3  ;;  %44 = vst.msk [vmem:[#allocation2 + $0x60] sm:$0xff] %vm31_vm0, %v724_v16 }
  0x13   :  { %677 = vmatpush.bf16.msra.mxu2 %v663_v3  ;;  %678 = vmatpush.bf16.msra.mxu3 %v663_v3  ;;  %45 = vst.msk [vmem:[#allocation2 + $0x68] sm:$0xff] %vm31_vm0, %v724_v16 }
  0x14   :  { %46 = vst.msk [vmem:[#allocation2 + $0x70] sm:$0xff] %vm31_vm0, %v724_v16 }
  0x15   :  { %47 = vst.msk [vmem:[#allocation2 + $0x78] sm:$0xff] %vm31_vm0, %v724_v16  ;;  %v72_v26 = vld [vmem:[#allocation2 + $0x40] sm:$0xff] }
  0x16   :  { %292 = vmatpush.bf16.msra.mxu0 %v662_v4  ;;  %679 = vmatpush.bf16.msra.mxu1 %v662_v4  ;;  %48 = vst.msk [vmem:[#allocation2 + $0x80] sm:$0xff] %vm31_vm0, %v724_v16  ;;  %v73_v39 = vld [vmem:[#allocation2 + $0x48] sm:$0xff] }
  0x17   :  { %680 = vmatpush.bf16.msra.mxu2 %v662_v4  ;;  %681 = vmatpush.bf16.msra.mxu3 %v662_v4  ;;  %49 = vst.msk [vmem:[#allocation2 + $0x88] sm:$0xff] %vm31_vm0, %v724_v16  ;;  %v74_v57 = vld [vmem:[#allocation2 + $0x50] sm:$0xff] }
  0x18   :  { %50 = vst.msk [vmem:[#allocation2 + $0x90] sm:$0xff] %vm31_vm0, %v724_v16 }
  0x19   :  { %51 = vst.msk [vmem:[#allocation2 + $0x98] sm:$0xff] %vm31_vm0, %v724_v16 }
  0x1a   :  { %293 = vmatpush.bf16.msra.mxu0 %v661_v5  ;;  %682 = vmatpush.bf16.msra.mxu1 %v661_v5  ;;  %52 = vst.msk [vmem:[#allocation2 + $0xa0] sm:$0xff] %vm31_vm0, %v724_v16 }
  0x1b   :  { %683 = vmatpush.bf16.msra.mxu2 %v661_v5  ;;  %684 = vmatpush.bf16.msra.mxu3 %v661_v5  ;;  %53 = vst.msk [vmem:[#allocation2 + $0xa8] sm:$0xff] %vm31_vm0, %v724_v16 }
  0x1c   :  { %54 = vst.msk [vmem:[#allocation2 + $0xb0] sm:$0xff] %vm31_vm0, %v724_v16 }
  0x1d   :  { %55 = vst.msk [vmem:[#allocation2 + $0xb8] sm:$0xff] %vm31_vm0, %v724_v16  ;;  %v80_v31 = vld [vmem:[#allocation2 + $0x80] sm:$0xff] }
  0x1e   :  { %294 = vmatpush.bf16.msra.mxu0 %v660_v6  ;;  %685 = vmatpush.bf16.msra.mxu1 %v660_v6  ;;  %56 = vst.msk [vmem:[#allocation2 + $0xc0] sm:$0xff] %vm31_vm0, %v724_v16  ;;  %v81_v47 = vld [vmem:[#allocation2 + $0x88] sm:$0xff] }
  0x1f   :  { %686 = vmatpush.bf16.msra.mxu2 %v660_v6  ;;  %687 = vmatpush.bf16.msra.mxu3 %v660_v6  ;;  %57 = vst.msk [vmem:[#allocation2 + $0xc8] sm:$0xff] %vm31_vm0, %v724_v16  ;;  %v82_v1 = vld [vmem:[#allocation2 + $0x90] sm:$0xff] }
  0x20   :  { %58 = vst.msk [vmem:[#allocation2 + $0xd0] sm:$0xff] %vm31_vm0, %v724_v16 }
  0x21   :  { %59 = vst.msk [vmem:[#allocation2 + $0xd8] sm:$0xff] %vm31_vm0, %v724_v16 }
  0x22   :  { %295 = vmatpush.bf16.msra.mxu0 %v659_v7  ;;  %688 = vmatpush.bf16.msra.mxu1 %v659_v7  ;;  %60 = vst.msk [vmem:[#allocation2 + $0xe0] sm:$0xff] %vm31_vm0, %v724_v16 }
  0x23   :  { %689 = vmatpush.bf16.msra.mxu2 %v659_v7  ;;  %690 = vmatpush.bf16.msra.mxu3 %v659_v7  ;;  %61 = vst.msk [vmem:[#allocation2 + $0xe8] sm:$0xff] %vm31_vm0, %v724_v16  ;;  %v67_v7 = vld [vmem:[#allocation2 + $0x18] sm:$0xff] }
  0x24   :  { %62 = vst.msk [vmem:[#allocation2 + $0xf0] sm:$0xff] %vm31_vm0, %v724_v16 }
  0x25   :  { %296 = vmatmul.bf16.vlgmr.msra.gmra.mxu0 %v643_v8  ;;  %316 = vmatmul.bf16.vlgmr.msra.gmra.mxu1 %v647_v9  ;;  %63 = vst.msk [vmem:[#allocation2 + $0xf8] sm:$0xff] %vm31_vm0, %v724_v16  ;;  %v88_v32 = vld [vmem:[#allocation2 + $0xc0] sm:$0xff] }
  0x26   :  { %336 = vmatmul.bf16.vlgmr.msra.gmra.mxu2 %v651_v10  ;;  %356 = vmatmul.bf16.vlgmr.msra.gmra.mxu3 %v655_v11  ;;  %v89_v48 = vld [vmem:[#allocation2 + $0xc8] sm:$0xff]  ;;  %v75_v11 = vld [vmem:[#allocation2 + $0x58] sm:$0xff] }
  0x27   :  { %v90_v2 = vld [vmem:[#allocation2 + $0xd0] sm:$0xff] }
  0x35   :  { %301 = vmatmul.bf16.gmra.mxu0 %v644_v12  ;;  %321 = vmatmul.bf16.gmra.mxu1 %v648_v13 }
  0x36   :  { %341 = vmatmul.bf16.gmra.mxu2 %v652_v14  ;;  %361 = vmatmul.bf16.gmra.mxu3 %v656_v15 }
  0x45   :  { %306 = vmatmul.bf16.gmra.mxu0 %v645_v17  ;;  %326 = vmatmul.bf16.gmra.mxu1 %v649_v18 }
  0x46   :  { %346 = vmatmul.bf16.gmra.mxu2 %v653_v19  ;;  %366 = vmatmul.bf16.gmra.mxu3 %v657_v20  ;;  %v83_v19 = vld [vmem:[#allocation2 + $0x98] sm:$0xff] }
  0x55   :  { %311 = vmatmul.bf16.gmra.mxu0 %v646_v21  ;;  %331 = vmatmul.bf16.gmra.mxu1 %v650_v22 }
  0x56   :  { %351 = vmatmul.bf16.gmra.mxu2 %v654_v23  ;;  %371 = vmatmul.bf16.gmra.mxu3 %v658_v24  ;;  %v91_v24 = vld [vmem:[#allocation2 + $0xd8] sm:$0xff] }
  0xa2   :  { %v297_v27 = vpop.f32.mrf.mxu0  ;;  %v317_v28 = vpop.f32.mrf.mxu1 }
  0xa3   :  { %v377_v29 = vadd.f32 %v297_v27, %v64_v25  ;;  %v385_v30 = vadd.f32 %v317_v28, %v72_v26  ;;  %v68_v28 = vld [vmem:[#allocation2 + $0x20] sm:$0xff] }
  0xa5   :  { %410 = vst.msk [vmem:[#allocation2] sm:$0xff] %vm31_vm0, %v377_v29 }
  0xa6   :  { %418 = vst.msk [vmem:[#allocation2 + $0x40] sm:$0xff] %vm31_vm0, %v385_v30 }
  0xa9   :  { %v337_v34 = vpop.f32.mrf.mxu2  ;;  %v357_v35 = vpop.f32.mrf.mxu3 }
  0xaa   :  { %v393_v36 = vadd.f32 %v337_v34, %v80_v31  ;;  %v401_v37 = vadd.f32 %v357_v35, %v88_v32  ;;  %v299_v38 = vpop.f32.mrf.mxu0  ;;  %v319_v40 = vpop.f32.mrf.mxu1 }
  0xab   :  { %v378_v41 = vadd.f32 %v299_v38, %v65_v33  ;;  %v386_v45 = vadd.f32 %v319_v40, %v73_v39  ;;  %v84_v39 = vld [vmem:[#allocation2 + $0xa0] sm:$0xff] }
  0xac   :  { %v445_v42 = vld [vmem:[#allocation2] sm:$0xff]  ;;  %426 = vst.msk [vmem:[#allocation2 + $0x80] sm:$0xff] %vm31_vm0, %v393_v36 }
  0xad   :  { %v477_v43 = vpack.c.bf16 %v445_v42, %v445_v42  ;;  %v453_v44 = vld [vmem:[#allocation2 + $0x40] sm:$0xff]  ;;  %434 = vst.msk [vmem:[#allocation2 + $0xc0] sm:$0xff] %vm31_vm0, %v401_v37 }
  0xae   :  { %v485_v46 = vpack.c.bf16 %v453_v44, %v453_v44  ;;  %411 = vst.msk [vmem:[#allocation2 + $0x8] sm:$0xff] %vm31_vm0, %v378_v41  ;;  %v76_v37 = vld [vmem:[#allocation2 + $0x60] sm:$0xff] }
  0xaf   :  { %510 = vst.msk [vmem:[%s961_s2] sm:$0xf] %vm509_vm1, %v477_v43  ;;  %v92_v40 = vld [vmem:[#allocation2 + $0xe0] sm:$0xff] }
  0xb0   :  { %518 = vst.msk [vmem:[%s961_s2 + $0x20] sm:$0xf] %vm509_vm1, %v485_v46 }
  0xb1   :  { %419 = vst.msk [vmem:[#allocation2 + $0x48] sm:$0xff] %vm31_vm0, %v386_v45  ;;  %v339_v49 = vpop.f32.mrf.mxu2  ;;  %v359_v50 = vpop.f32.mrf.mxu3 }
  0xb2   :  { %v394_v51 = vadd.f32 %v339_v49, %v81_v47  ;;  %v402_v52 = vadd.f32 %v359_v50, %v89_v48  ;;  %v302_v54 = vpop.f32.mrf.mxu0  ;;  %v322_v55 = vpop.f32.mrf.mxu1  ;;  %v69_v47 = vld [vmem:[#allocation2 + $0x28] sm:$0xff] }
  0xb3   :  { %v461_v56 = vld [vmem:[#allocation2 + $0x80] sm:$0xff]  ;;  %v379_v62 = vadd.f32 %v302_v54, %v66_v53  ;;  %v387_v0 = vadd.f32 %v322_v55, %v74_v57 }
  0xb4   :  { %v493_v58 = vpack.c.bf16 %v461_v56, %v461_v56  ;;  %v469_v59 = vld [vmem:[#allocation2 + $0xc0] sm:$0xff]  ;;  %427 = vst.msk [vmem:[#allocation2 + $0x88] sm:$0xff] %vm31_vm0, %v394_v51  ;;  %v77_v51 = vld [vmem:[#allocation2 + $0x68] sm:$0xff] }
  0xb5   :  { %v501_v60 = vpack.c.bf16 %v469_v59, %v469_v59  ;;  %v446_v61 = vld [vmem:[#allocation2 + $0x8] sm:$0xff]  ;;  %435 = vst.msk [vmem:[#allocation2 + $0xc8] sm:$0xff] %vm31_vm0, %v402_v52 }
  0xb6   :  { %526 = vst.msk [vmem:[%s961_s2 + $0x40] sm:$0xf] %vm509_vm1, %v493_v58  ;;  %v478_v63 = vpack.c.bf16 %v446_v61, %v446_v61  ;;  %v85_v58 = vld [vmem:[#allocation2 + $0xa8] sm:$0xff] }
  0xb7   :  { %534 = vst.msk [vmem:[%s961_s2 + $0x60] sm:$0xf] %vm509_vm1, %v501_v60  ;;  %v93_v59 = vld [vmem:[#allocation2 + $0xe8] sm:$0xff] }
  0xb8   :  { %511 = vst.msk [vmem:[%s961_s2 + $0x4] sm:$0xf] %vm509_vm1, %v478_v63  ;;  %v454_v3 = vld [vmem:[#allocation2 + $0x48] sm:$0xff] }
  0xb9   :  { %v486_v4 = vpack.c.bf16 %v454_v3, %v454_v3  ;;  %412 = vst.msk [vmem:[#allocation2 + $0x10] sm:$0xff] %vm31_vm0, %v379_v62  ;;  %v342_v5 = vpop.f32.mrf.mxu2  ;;  %v362_v6 = vpop.f32.mrf.mxu3  ;;  %v70_v3 = vld [vmem:[#allocation2 + $0x30] sm:$0xff] }
  0xba   :  { %420 = vst.msk [vmem:[#allocation2 + $0x50] sm:$0xff] %vm31_vm0, %v387_v0  ;;  %v395_v8 = vadd.f32 %v342_v5, %v82_v1  ;;  %v403_v9 = vadd.f32 %v362_v6, %v90_v2  ;;  %v304_v10 = vpop.f32.mrf.mxu0  ;;  %v324_v12 = vpop.f32.mrf.mxu1 }
  0xbb   :  { %519 = vst.msk [vmem:[%s961_s2 + $0x24] sm:$0xf] %vm509_vm1, %v486_v4  ;;  %v462_v13 = vld [vmem:[#allocation2 + $0x88] sm:$0xff]  ;;  %v380_v16 = vadd.f32 %v304_v10, %v67_v7  ;;  %v388_v18 = vadd.f32 %v324_v12, %v75_v11  ;;  %v78_v12 = vld [vmem:[#allocation2 + $0x70] sm:$0xff] }
  0xbc   :  { %v494_v14 = vpack.c.bf16 %v462_v13, %v462_v13  ;;  %v470_v15 = vld [vmem:[#allocation2 + $0xc8] sm:$0xff]  ;;  %428 = vst.msk [vmem:[#allocation2 + $0x90] sm:$0xff] %vm31_vm0, %v395_v8 }
  0xbd   :  { %v502_v17 = vpack.c.bf16 %v470_v15, %v470_v15  ;;  %436 = vst.msk [vmem:[#allocation2 + $0xd0] sm:$0xff] %vm31_vm0, %v403_v9  ;;  %v86_v15 = vld [vmem:[#allocation2 + $0xb0] sm:$0xff] }
  0xbe   :  { %527 = vst.msk [vmem:[%s961_s2 + $0x44] sm:$0xf] %vm509_vm1, %v494_v14 }
  0xbf   :  { %535 = vst.msk [vmem:[%s961_s2 + $0x64] sm:$0xf] %vm509_vm1, %v502_v17 }
  0xc0   :  { %v447_v20 = vld [vmem:[#allocation2 + $0x10] sm:$0xff]  ;;  %413 = vst.msk [vmem:[#allocation2 + $0x18] sm:$0xff] %vm31_vm0, %v380_v16 }
  0xc1   :  { %v479_v21 = vpack.c.bf16 %v447_v20, %v447_v20  ;;  %v455_v22 = vld [vmem:[#allocation2 + $0x50] sm:$0xff]  ;;  %421 = vst.msk [vmem:[#allocation2 + $0x58] sm:$0xff] %vm31_vm0, %v388_v18  ;;  %v344_v23 = vpop.f32.mrf.mxu2  ;;  %v364_v25 = vpop.f32.mrf.mxu3 }
  0xc2   :  { %v487_v26 = vpack.c.bf16 %v455_v22, %v455_v22  ;;  %v396_v27 = vadd.f32 %v344_v23, %v83_v19  ;;  %v307_v29 = vpop.f32.mrf.mxu0  ;;  %v327_v30 = vpop.f32.mrf.mxu1  ;;  %v404_v34 = vadd.f32 %v364_v25, %v91_v24  ;;  %v71_v24 = vld [vmem:[#allocation2 + $0x38] sm:$0xff] }
  0xc3   :  { %512 = vst.msk [vmem:[%s961_s2 + $0x8] sm:$0xf] %vm509_vm1, %v479_v21  ;;  %v463_v31 = vld [vmem:[#allocation2 + $0x90] sm:$0xff]  ;;  %v381_v36 = vadd.f32 %v307_v29, %v68_v28  ;;  %v389_v43 = vadd.f32 %v327_v30, %v76_v37 }
  0xc4   :  { %520 = vst.msk [vmem:[%s961_s2 + $0x28] sm:$0xf] %vm509_vm1, %v487_v26  ;;  %v495_v32 = vpack.c.bf16 %v463_v31, %v463_v31  ;;  %v471_v33 = vld [vmem:[#allocation2 + $0xd0] sm:$0xff] }
  0xc5   :  { %v503_v35 = vpack.c.bf16 %v471_v33, %v471_v33  ;;  %429 = vst.msk [vmem:[#allocation2 + $0x98] sm:$0xff] %vm31_vm0, %v396_v27  ;;  %v94_v21 = vld [vmem:[#allocation2 + $0xf0] sm:$0xff]  ;;  %v79_v27 = vld [vmem:[#allocation2 + $0x78] sm:$0xff] }
  0xc6   :  { %528 = vst.msk [vmem:[%s961_s2 + $0x48] sm:$0xf] %vm509_vm1, %v495_v32 }
  0xc7   :  { %536 = vst.msk [vmem:[%s961_s2 + $0x68] sm:$0xf] %vm509_vm1, %v503_v35  ;;  %v448_v38 = vld [vmem:[#allocation2 + $0x18] sm:$0xff] }
  0xc8   :  { %v480_v41 = vpack.c.bf16 %v448_v38, %v448_v38  ;;  %v456_v42 = vld [vmem:[#allocation2 + $0x58] sm:$0xff]  ;;  %437 = vst.msk [vmem:[#allocation2 + $0xd8] sm:$0xff] %vm31_vm0, %v404_v34 }
  0xc9   :  { %v488_v44 = vpack.c.bf16 %v456_v42, %v456_v42  ;;  %414 = vst.msk [vmem:[#allocation2 + $0x20] sm:$0xff] %vm31_vm0, %v381_v36  ;;  %v347_v45 = vpop.f32.mrf.mxu2  ;;  %v367_v46 = vpop.f32.mrf.mxu3  ;;  %v87_v35 = vld [vmem:[#allocation2 + $0xb8] sm:$0xff] }
  0xca   :  { %513 = vst.msk [vmem:[%s961_s2 + $0xc] sm:$0xf] %vm509_vm1, %v480_v41  ;;  %v397_v48 = vadd.f32 %v347_v45, %v84_v39  ;;  %v405_v49 = vadd.f32 %v367_v46, %v92_v40  ;;  %v309_v50 = vpop.f32.mrf.mxu0  ;;  %v329_v52 = vpop.f32.mrf.mxu1  ;;  %v95_v36 = vld [vmem:[#allocation2 + $0xf8] sm:$0xff] }
  0xcb   :  { %521 = vst.msk [vmem:[%s961_s2 + $0x2c] sm:$0xf] %vm509_vm1, %v488_v44  ;;  %v382_v54 = vadd.f32 %v309_v50, %v69_v47  ;;  %v390_v56 = vadd.f32 %v329_v52, %v77_v51 }
  0xcc   :  { %v464_v53 = vld [vmem:[#allocation2 + $0x98] sm:$0xff]  ;;  %422 = vst.msk [vmem:[#allocation2 + $0x60] sm:$0xff] %vm31_vm0, %v389_v43 }
  0xcd   :  { %v496_v55 = vpack.c.bf16 %v464_v53, %v464_v53  ;;  %430 = vst.msk [vmem:[#allocation2 + $0xa0] sm:$0xff] %vm31_vm0, %v397_v48 }
  0xce   :  { %438 = vst.msk [vmem:[#allocation2 + $0xe0] sm:$0xff] %vm31_vm0, %v405_v49 }
  0xcf   :  { %529 = vst.msk [vmem:[%s961_s2 + $0x4c] sm:$0xf] %vm509_vm1, %v496_v55  ;;  %v472_v57 = vld [vmem:[#allocation2 + $0xd8] sm:$0xff] }
  0xd0   :  { %v504_v60 = vpack.c.bf16 %v472_v57, %v472_v57  ;;  %v449_v61 = vld [vmem:[#allocation2 + $0x20] sm:$0xff]  ;;  %415 = vst.msk [vmem:[#allocation2 + $0x28] sm:$0xff] %vm31_vm0, %v382_v54 }
  0xd1   :  { %v481_v62 = vpack.c.bf16 %v449_v61, %v449_v61  ;;  %423 = vst.msk [vmem:[#allocation2 + $0x68] sm:$0xff] %vm31_vm0, %v390_v56  ;;  %v349_v63 = vpop.f32.mrf.mxu2  ;;  %v369_v0 = vpop.f32.mrf.mxu3 }
  0xd2   :  { %537 = vst.msk [vmem:[%s961_s2 + $0x6c] sm:$0xf] %vm509_vm1, %v504_v60  ;;  %v398_v1 = vadd.f32 %v349_v63, %v85_v58  ;;  %v406_v2 = vadd.f32 %v369_v0, %v93_v59  ;;  %v312_v4 = vpop.f32.mrf.mxu0  ;;  %v332_v5 = vpop.f32.mrf.mxu1 }
  0xd3   :  { %514 = vst.msk [vmem:[%s961_s2 + $0x10] sm:$0xf] %vm509_vm1, %v481_v62  ;;  %v457_v6 = vld [vmem:[#allocation2 + $0x60] sm:$0xff]  ;;  %v383_v11 = vadd.f32 %v312_v4, %v70_v3  ;;  %v391_v18 = vadd.f32 %v332_v5, %v78_v12 }
  0xd4   :  { %v489_v7 = vpack.c.bf16 %v457_v6, %v457_v6  ;;  %v465_v8 = vld [vmem:[#allocation2 + $0xa0] sm:$0xff]  ;;  %431 = vst.msk [vmem:[#allocation2 + $0xa8] sm:$0xff] %vm31_vm0, %v398_v1 }
  0xd5   :  { %v497_v9 = vpack.c.bf16 %v465_v8, %v465_v8  ;;  %v473_v10 = vld [vmem:[#allocation2 + $0xe0] sm:$0xff]  ;;  %439 = vst.msk [vmem:[#allocation2 + $0xe8] sm:$0xff] %vm31_vm0, %v406_v2 }
  0xd6   :  { %522 = vst.msk [vmem:[%s961_s2 + $0x30] sm:$0xf] %vm509_vm1, %v489_v7  ;;  %v505_v13 = vpack.c.bf16 %v473_v10, %v473_v10 }
  0xd7   :  { %530 = vst.msk [vmem:[%s961_s2 + $0x50] sm:$0xf] %vm509_vm1, %v497_v9  ;;  %v450_v14 = vld [vmem:[#allocation2 + $0x28] sm:$0xff] }
  0xd8   :  { %538 = vst.msk [vmem:[%s961_s2 + $0x70] sm:$0xf] %vm509_vm1, %v505_v13  ;;  %v482_v16 = vpack.c.bf16 %v450_v14, %v450_v14  ;;  %v458_v17 = vld [vmem:[#allocation2 + $0x68] sm:$0xff] }
  0xd9   :  { %v490_v19 = vpack.c.bf16 %v458_v17, %v458_v17  ;;  %416 = vst.msk [vmem:[#allocation2 + $0x30] sm:$0xff] %vm31_vm0, %v383_v11  ;;  %v352_v20 = vpop.f32.mrf.mxu2  ;;  %v372_v22 = vpop.f32.mrf.mxu3 }
  0xda   :  { %515 = vst.msk [vmem:[%s961_s2 + $0x14] sm:$0xf] %vm509_vm1, %v482_v16  ;;  %v399_v23 = vadd.f32 %v352_v20, %v86_v15  ;;  %v314_v25 = vpop.f32.mrf.mxu0  ;;  %v334_v28 = vpop.f32.mrf.mxu1  ;;  %v407_v31 = vadd.f32 %v372_v22, %v94_v21 }
  0xdb   :  { %523 = vst.msk [vmem:[%s961_s2 + $0x34] sm:$0xf] %vm509_vm1, %v490_v19  ;;  %v466_v26 = vld [vmem:[#allocation2 + $0xa8] sm:$0xff]  ;;  %v384_v33 = vadd.f32 %v314_v25, %v71_v24  ;;  %v392_v34 = vadd.f32 %v334_v28, %v79_v27 }
  0xdc   :  { %v498_v29 = vpack.c.bf16 %v466_v26, %v466_v26  ;;  %v474_v30 = vld [vmem:[#allocation2 + $0xe8] sm:$0xff]  ;;  %424 = vst.msk [vmem:[#allocation2 + $0x70] sm:$0xff] %vm31_vm0, %v391_v18 }
  0xdd   :  { %v506_v32 = vpack.c.bf16 %v474_v30, %v474_v30  ;;  %432 = vst.msk [vmem:[#allocation2 + $0xb0] sm:$0xff] %vm31_vm0, %v399_v23 }
  0xde   :  { %531 = vst.msk [vmem:[%s961_s2 + $0x54] sm:$0xf] %vm509_vm1, %v498_v29 }
  0xdf   :  { %539 = vst.msk [vmem:[%s961_s2 + $0x74] sm:$0xf] %vm509_vm1, %v506_v32 }
  0xe0   :  { %v451_v37 = vld [vmem:[#allocation2 + $0x30] sm:$0xff]  ;;  %440 = vst.msk [vmem:[#allocation2 + $0xf0] sm:$0xff] %vm31_vm0, %v407_v31 }
  0xe1   :  { %v483_v38 = vpack.c.bf16 %v451_v37, %v451_v37  ;;  %417 = vst.msk [vmem:[#allocation2 + $0x38] sm:$0xff] %vm31_vm0, %v384_v33  ;;  %v354_v39 = vpop.f32.mrf.mxu2  ;;  %v374_v40 = vpop.f32.mrf.mxu3 }
  0xe2   :  { %425 = vst.msk [vmem:[#allocation2 + $0x78] sm:$0xff] %vm31_vm0, %v392_v34  ;;  %v400_v41 = vadd.f32 %v354_v39, %v87_v35  ;;  %v408_v42 = vadd.f32 %v374_v40, %v95_v36 }
  0xe3   :  { %516 = vst.msk [vmem:[%s961_s2 + $0x18] sm:$0xf] %vm509_vm1, %v483_v38  ;;  %v459_v43 = vld [vmem:[#allocation2 + $0x70] sm:$0xff] }
  0xe4   :  { %v491_v44 = vpack.c.bf16 %v459_v43, %v459_v43  ;;  %v467_v45 = vld [vmem:[#allocation2 + $0xb0] sm:$0xff]  ;;  %433 = vst.msk [vmem:[#allocation2 + $0xb8] sm:$0xff] %vm31_vm0, %v400_v41 }
  0xe5   :  { %v499_v46 = vpack.c.bf16 %v467_v45, %v467_v45  ;;  %441 = vst.msk [vmem:[#allocation2 + $0xf8] sm:$0xff] %vm31_vm0, %v408_v42 }
  0xe6   :  { %524 = vst.msk [vmem:[%s961_s2 + $0x38] sm:$0xf] %vm509_vm1, %v491_v44 }
  0xe7   :  { %532 = vst.msk [vmem:[%s961_s2 + $0x58] sm:$0xf] %vm509_vm1, %v499_v46  ;;  %v475_v47 = vld [vmem:[#allocation2 + $0xf0] sm:$0xff] }
  0xe8   :  { %v507_v48 = vpack.c.bf16 %v475_v47, %v475_v47  ;;  %v452_v49 = vld [vmem:[#allocation2 + $0x38] sm:$0xff] }
  0xe9   :  { %v484_v50 = vpack.c.bf16 %v452_v49, %v452_v49  ;;  %v460_v51 = vld [vmem:[#allocation2 + $0x78] sm:$0xff] }
  0xea   :  { %540 = vst.msk [vmem:[%s961_s2 + $0x78] sm:$0xf] %vm509_vm1, %v507_v48  ;;  %v492_v52 = vpack.c.bf16 %v460_v51, %v460_v51 }
  0xeb   :  { %517 = vst.msk [vmem:[%s961_s2 + $0x1c] sm:$0xf] %vm509_vm1, %v484_v50  ;;  %v468_v53 = vld [vmem:[#allocation2 + $0xb8] sm:$0xff] }
  0xec   :  { %525 = vst.msk [vmem:[%s961_s2 + $0x3c] sm:$0xf] %vm509_vm1, %v492_v52  ;;  %v500_v54 = vpack.c.bf16 %v468_v53, %v468_v53  ;;  %v476_v55 = vld [vmem:[#allocation2 + $0xf8] sm:$0xff] }
  0xed   :  { %v508_v56 = vpack.c.bf16 %v476_v55, %v476_v55 }
  0xee   :  { %533 = vst.msk [vmem:[%s961_s2 + $0x5c] sm:$0xf] %vm509_vm1, %v500_v54 }
  0xef   :  { %541 = vst.msk [vmem:[%s961_s2 + $0x7c] sm:$0xf] %vm509_vm1, %v508_v56 }
  0xf0   :  { %546 = vsyncpa [#allocation4], 1 }

</bundles_post_ra>
